<compile_context>
chip_gen: v7x
topology: tpu7x:2x2x1
jax: 0.10.0
libtpu: 0.0.40
codegen_flags: <defaults>
</compile_context>

<pallas_src>
import jax
import jax.numpy as jnp
from jax.experimental import pallas as pl
from jax.experimental.pallas import tpu as pltpu


# ------------------------------- tile-size helpers --------------------------------
def _choose_row_tile(H):
    # Largest row tile from a fixed menu that divides H (even, so it pools cleanly);
    # bigger tiles cut per-grid-step overhead and enlarge the MXU M dim.
    for th in (56, 32, 8):
        if H % th == 0:
            return th
    return H


def _choose_k_tile(K, tk_max=4096):
    # Largest multiple-of-128 divisor of K that is <= tk_max (never "one giant block
    # of the whole fc1 weight", which was the previous footgun at real size).
    t = min(tk_max, K)
    t -= t % 128
    while t >= 128:
        if K % t == 0:
            return t
        t -= 128
    return K  # only reached for small / oddly-shaped K


# ---------------- fused conv3x3 (pad=1) + bias + ReLU + maxpool 2x2 ----------------
def _conv_relu_pool_kernel(xp_ref, w_ref, b_ref, o_ref):
    # xp_ref: (1, H+2, W+2, Cin)   zero-padded full image (bf16), resident across row tiles
    # w_ref : (9*Cin, Cout)        conv weight, rows ordered (dy, dx, cin)   (bf16)
    # b_ref : (1, Cout)            bias (f32)
    # o_ref : (1, TH/2, W/2, Cout) pooled output row-tile (bf16)
    tho, wo, cout = o_ref.shape[1], o_ref.shape[2], o_ref.shape[3]
    th, W = 2 * tho, 2 * wo
    cin = xp_ref.shape[3]

    # Row offset of this spatial tile in the padded input.
    row0 = pl.multiple_of(pl.program_id(1) * th, th)
    x_tile = xp_ref[0, pl.ds(row0, th + 2), :, :]            # (TH+2, W+2, Cin)

    # im2col: concatenate the 9 shifted taps on the channel axis -> ONE MXU matmul
    # with K = 9*Cin instead of 9 skinny matmuls.
    cols = [x_tile[dy:dy + th, dx:dx + W, :]
            for dy in range(3) for dx in range(3)]            # each (TH, W, Cin)
    patches = jnp.concatenate(cols, axis=-1).reshape(th * W, 9 * cin)

    y = jnp.dot(patches, w_ref[...], preferred_element_type=jnp.float32)
    y = jnp.maximum(y + b_ref[...], 0.0)                      # bias + ReLU (f32)

    # Fused 2x2 max pool, stride 2.
    y = y.reshape(tho, 2, wo, 2, cout)
    o_ref[0] = jnp.max(jnp.max(y, axis=3), axis=1).astype(o_ref.dtype)


def conv3x3_relu_pool(x_nhwc, w_mat, b_row, *, th=None):
    # x_nhwc: (N, H, W, Cin); w_mat: (9*Cin, Cout) bf16; b_row: (1, Cout) f32.
    N, H, W, Cin = x_nhwc.shape
    Cout = w_mat.shape[1]
    assert w_mat.shape[0] == 9 * Cin
    Ho, Wo = H // 2, W // 2
    th = _choose_row_tile(H) if th is None else th
    tho = th // 2

    # TODO(synk): the next layer's zero-padding could be folded into this kernel's
    # output write; kept as a boundary jnp.pad (one extra cheap pass) for now.
    xp = jnp.pad(x_nhwc.astype(jnp.bfloat16), ((0, 0), (1, 1), (1, 1), (0, 0)))

    return pl.pallas_call(
        _conv_relu_pool_kernel,
        out_shape=jax.ShapeDtypeStruct((N, Ho, Wo, Cout), jnp.bfloat16),
        grid_spec=pltpu.PrefetchScalarGridSpec(
            num_scalar_prefetch=0,
            grid=(N, H // th),
            in_specs=[
                # whole padded image per batch element; block index constant along the
                # row-tile axis so it is fetched once per image.
                pl.BlockSpec((1, H + 2, W + 2, Cin), lambda n, h: (n, 0, 0, 0)),
                pl.BlockSpec((9 * Cin, Cout), lambda n, h: (0, 0)),
                pl.BlockSpec((1, Cout), lambda n, h: (0, 0)),
            ],
            out_specs=pl.BlockSpec((1, tho, Wo, Cout), lambda n, h: (n, h, 0, 0)),
        ),
        compiler_params=pltpu.CompilerParams(
            dimension_semantics=("parallel", "parallel"),
            vmem_limit_bytes=32 * 1024 * 1024),
    )(xp, w_mat, b_row)


# ------------------- fused MLP head: fc1 (K-tiled) + ReLU + fc2 --------------------
def _mlp_head_kernel(x_ref, w1_ref, b1_ref, w2_ref, b2_ref, o_ref, acc_ref):
    # grid = (hd_shards, K//tk): axis 0 shards the fc1/fc2 hidden dim ("parallel",
    # megacore-friendly on v7x); axis 1 is the fc1 reduction ("arbitrary", last).
    # x_ref : (N, TK)    bf16   w1_ref: (TK, Hs) bf16   b1_ref: (1, Hs) f32
    # w2_ref: (Hs, Mp)   bf16   b2_ref: (1, Mp)  f32
    # o_ref : (1, N, Mp) f32 partial-logit slab   acc_ref: (N, Hs) f32 scratch
    p = pl.program_id(0)
    k = pl.program_id(1)

    @pl.when(k == 0)
    def _():
        acc_ref[...] = jnp.zeros_like(acc_ref)

    acc_ref[...] += jnp.dot(x_ref[...], w1_ref[...],
                            preferred_element_type=jnp.float32)

    @pl.when(k == pl.num_programs(1) - 1)
    def _():
        h = jnp.maximum(acc_ref[...] + b1_ref[...], 0.0)          # fc1 bias + ReLU
        part = jnp.dot(h.astype(w2_ref.dtype), w2_ref[...],
                       preferred_element_type=jnp.float32)
        # only shard 0 adds the fc2 bias (partial slabs are summed in the wrapper)
        o_ref[0] = part + b2_ref[...] * jnp.where(p == 0, 1.0, 0.0)


def mlp_head(x_flat, w1, b1, w2p, b2p, num_classes, *, tk_max=4096, hd_shards=2):
    # x_flat: (N, K) NHWC-flattened activations; w1: (K, Hd) bf16 (rows pre-permuted);
    # b1: (1, Hd) f32; w2p: (Hd, Mp) bf16 lane-padded; b2p: (1, Mp) f32.
    N, K = x_flat.shape
    Hd = w1.shape[1]
    Mp = w2p.shape[1]
    if Hd % (hd_shards * 128) != 0:
        hd_shards = 1
    hs = Hd // hd_shards
    tk = _choose_k_tile(K, tk_max)

    parts = pl.pallas_call(
        _mlp_head_kernel,
        out_shape=jax.ShapeDtypeStruct((hd_shards, N, Mp), jnp.float32),
        grid_spec=pltpu.PrefetchScalarGridSpec(
            num_scalar_prefetch=0,
            grid=(hd_shards, K // tk),
            in_specs=[
                pl.BlockSpec((N, tk), lambda p, k: (0, k)),
                pl.BlockSpec((tk, hs), lambda p, k: (k, p)),
                pl.BlockSpec((1, hs), lambda p, k: (0, p)),
                pl.BlockSpec((hs, Mp), lambda p, k: (p, 0)),
                pl.BlockSpec((1, Mp), lambda p, k: (0, 0)),
            ],
            out_specs=pl.BlockSpec((1, N, Mp), lambda p, k: (p, 0, 0)),
            scratch_shapes=[pltpu.VMEM((N, hs), jnp.float32)],
        ),
        compiler_params=pltpu.CompilerParams(
            dimension_semantics=("parallel", "arbitrary"),
            vmem_limit_bytes=48 * 1024 * 1024),
    )(x_flat.astype(jnp.bfloat16), w1, b1, w2p, b2p)

    logits = jnp.sum(parts, axis=0) if hd_shards > 1 else parts[0]
    return logits[:, :num_classes]


# ------------------- one-time parameter preparation (load time) --------------------
def prepare_params(p):
    """Hoists all weight layout permutes + dtype casts out of the per-call forward path
    (at real size the per-call fc1 transpose+cast alone was ~600+ MB of HBM traffic)."""
    C = p["w2"].shape[-1]                        # channels entering the flatten (64)
    hw = p["fc1_w"].shape[0] // C
    ho = wo = int(round(hw ** 0.5))
    Hd = p["fc1_w"].shape[1]
    M = p["fc2_w"].shape[1]
    Mp = pl.cdiv(M, 128) * 128                   # lane-dense fc2 output width
    # torch.flatten on NCHW is channel-major; permute fc1 rows ONCE so the NHWC
    # activation can be flattened directly (no per-call activation transpose).
    fc1_w = (p["fc1_w"].reshape(C, ho, wo, Hd).transpose(1, 2, 0, 3)
             .reshape(ho * wo * C, Hd).astype(jnp.bfloat16))
    return dict(
        conv1_w=p["w1"].reshape(-1, p["w1"].shape[-1]).astype(jnp.bfloat16),
        conv1_b=p["b1"].reshape(1, -1).astype(jnp.float32),
        conv2_w=p["w2"].reshape(-1, p["w2"].shape[-1]).astype(jnp.bfloat16),
        conv2_b=p["b2"].reshape(1, -1).astype(jnp.float32),
        fc1_w=fc1_w,
        fc1_b=p["fc1_b"].reshape(1, -1).astype(jnp.float32),
        fc2_w=jnp.pad(p["fc2_w"], ((0, 0), (0, Mp - M))).astype(jnp.bfloat16),
        fc2_b=jnp.pad(p["fc2_b"], (0, Mp - M)).reshape(1, -1).astype(jnp.float32),
        num_classes=M,
    )


# -------------------------------- full forward pass --------------------------------
def plantnet_forward(x_nchw, prep):
    x = jnp.transpose(x_nchw, (0, 2, 3, 1))                   # NCHW -> NHWC
    x = conv3x3_relu_pool(x, prep["conv1_w"], prep["conv1_b"])
    x = conv3x3_relu_pool(x, prep["conv2_w"], prep["conv2_b"])
    N = x.shape[0]
    x_flat = x.reshape(N, -1)                                  # (h, w, c) flatten order
    return mlp_head(x_flat, prep["fc1_w"], prep["fc1_b"],
                    prep["fc2_w"], prep["fc2_b"], prep["num_classes"])


# -------------------------------- pure-JAX reference -------------------------------
def _ref_conv_relu(x, w, b):
    N, H, W, Cin = x.shape
    Cout = w.shape[-1]
    xp = jnp.pad(x, ((0, 0), (1, 1), (1, 1), (0, 0)))
    acc = jnp.zeros((N, H, W, Cout), jnp.float32)
    for dy in range(3):
        for dx in range(3):
            acc = acc + jnp.einsum("nhwc,co->nhwo",
                                   xp[:, dy:dy + H, dx:dx + W, :], w[dy, dx])
    return jnp.maximum(acc + b, 0.0)


def _ref_pool(x):
    N, H, W, C = x.shape
    return x.reshape(N, H // 2, 2, W // 2, 2, C).max(axis=(2, 4))


def _ref_forward(x_nchw, p):
    x = jnp.transpose(x_nchw, (0, 2, 3, 1))
    x = _ref_pool(_ref_conv_relu(x, p["w1"], p["b1"]))
    x = _ref_pool(_ref_conv_relu(x, p["w2"], p["b2"]))
    x = jnp.transpose(x, (0, 3, 1, 2)).reshape(x.shape[0], -1)    # torch flatten order
    x = jnp.maximum(jnp.dot(x, p["fc1_w"]) + p["fc1_b"], 0.0)
    return jnp.dot(x, p["fc2_w"]) + p["fc2_b"]


if __name__ == "__main__":
    key = jax.random.PRNGKey(0)
    ks = jax.random.split(key, 9)

    N, S, num_classes = 2, 16, 5          # small stand-in (original: 224x224, classes=len(dataset))
    fc1_in = 64 * (S // 4) * (S // 4)     # == 64*56*56 when S == 224

    params = dict(
        w1=0.10 * jax.random.normal(ks[0], (3, 3, 3, 32), jnp.float32),
        b1=0.10 * jax.random.normal(ks[1], (32,), jnp.float32),
        w2=0.05 * jax.random.normal(ks[2], (3, 3, 32, 64), jnp.float32),
        b2=0.10 * jax.random.normal(ks[3], (64,), jnp.float32),
        fc1_w=0.02 * jax.random.normal(ks[4], (fc1_in, 512), jnp.float32),
        fc1_b=0.10 * jax.random.normal(ks[5], (512,), jnp.float32),
        fc2_w=0.05 * jax.random.normal(ks[6], (512, num_classes), jnp.float32),
        fc2_b=0.10 * jax.random.normal(ks[7], (num_classes,), jnp.float32),
    )
    x = jax.random.normal(ks[8], (N, 3, S, S), jnp.float32)       # NCHW, like PyTorch

    prep = jax.block_until_ready(prepare_params(params))          # one-time, load-time
    out = jax.block_until_ready(plantnet_forward(x, prep))
    ref = jax.block_until_ready(_ref_forward(x, params))

    assert out.shape == (N, num_classes), out.shape
    # bf16 matmul inputs with f32 accumulation -> small numerical drift vs f32 reference.
    assert bool(jnp.allclose(out, ref, rtol=3e-2, atol=3e-2)), (out, ref)
    # TODO(synk): dataset/ImageFolder class discovery is data loading, not part of forward.
    print("KERNEL_OK")
</pallas_src>

<mosaic_0001>
module attributes {stable_mosaic.version = 11 : i64} {
  func.func @_conv_relu_pool_kernel(%arg0: i32, %arg1: i32, %arg2: memref<1x18x18x3xbf16, #tpu.memory_space<vmem>>, %arg3: memref<27x32xbf16, #tpu.memory_space<vmem>>, %arg4: memref<1x32xf32, #tpu.memory_space<vmem>>, %arg5: memref<1x4x8x32xbf16, #tpu.memory_space<vmem>>) attributes {dimension_semantics = [#tpu.dimension_semantics<parallel>, #tpu.dimension_semantics<parallel>], iteration_bounds = array<i64: 2, 2>, scalar_prefetch = 0 : i64, scratch_operands = 0 : i64, tpu.core_type = #tpu.core_type<tc>, window_params = [{transform_indices = @transform_0, window_bounds = array<i64: 1, 18, 18, 3>}, {pipeline_mode = #tpu.pipeline_mode<synchronous>, transform_indices = @transform_1, window_bounds = array<i64: 27, 32>}, {pipeline_mode = #tpu.pipeline_mode<synchronous>, transform_indices = @transform_2, window_bounds = array<i64: 1, 32>}, {transform_indices = @transform_3, window_bounds = array<i64: 1, 4, 8, 32>}]} {
    %c8_i32 = arith.constant 8 : i32
    %0 = arith.muli %arg1, %c8_i32 : i32
    %1 = tpu.assume_multiple %0, 8 : i32
    %c0 = arith.constant 0 : index
    %2 = arith.index_cast %1 : i32 to index
    %c0_0 = arith.constant 0 : index
    %c0_1 = arith.constant 0 : index
    %3 = vector.load %arg2[%c0, %2, %c0_0, %c0_1] : memref<1x18x18x3xbf16, #tpu.memory_space<vmem>>, vector<1x10x18x3xbf16>
    %4 = vector.shape_cast %3 : vector<1x10x18x3xbf16> to vector<10x18x3xbf16>
    %5 = vector.extract_strided_slice %4 {offsets = [0, 0, 0], sizes = [8, 16, 3], strides = [1, 1, 1]} : vector<10x18x3xbf16> to vector<8x16x3xbf16>
    %6 = vector.extract_strided_slice %4 {offsets = [0, 1, 0], sizes = [8, 16, 3], strides = [1, 1, 1]} : vector<10x18x3xbf16> to vector<8x16x3xbf16>
    %7 = vector.extract_strided_slice %4 {offsets = [0, 2, 0], sizes = [8, 16, 3], strides = [1, 1, 1]} : vector<10x18x3xbf16> to vector<8x16x3xbf16>
    %8 = vector.extract_strided_slice %4 {offsets = [1, 0, 0], sizes = [8, 16, 3], strides = [1, 1, 1]} : vector<10x18x3xbf16> to vector<8x16x3xbf16>
    %9 = vector.extract_strided_slice %4 {offsets = [1, 1, 0], sizes = [8, 16, 3], strides = [1, 1, 1]} : vector<10x18x3xbf16> to vector<8x16x3xbf16>
    %10 = vector.extract_strided_slice %4 {offsets = [1, 2, 0], sizes = [8, 16, 3], strides = [1, 1, 1]} : vector<10x18x3xbf16> to vector<8x16x3xbf16>
    %11 = vector.extract_strided_slice %4 {offsets = [2, 0, 0], sizes = [8, 16, 3], strides = [1, 1, 1]} : vector<10x18x3xbf16> to vector<8x16x3xbf16>
    %12 = vector.extract_strided_slice %4 {offsets = [2, 1, 0], sizes = [8, 16, 3], strides = [1, 1, 1]} : vector<10x18x3xbf16> to vector<8x16x3xbf16>
    %13 = vector.extract_strided_slice %4 {offsets = [2, 2, 0], sizes = [8, 16, 3], strides = [1, 1, 1]} : vector<10x18x3xbf16> to vector<8x16x3xbf16>
    %14 = tpu.concatenate %5, %6, %7, %8, %9, %10, %11, %12, %13 in 2 : vector<8x16x3xbf16>, vector<8x16x3xbf16>, vector<8x16x3xbf16>, vector<8x16x3xbf16>, vector<8x16x3xbf16>, vector<8x16x3xbf16>, vector<8x16x3xbf16>, vector<8x16x3xbf16>, vector<8x16x3xbf16> -> vector<8x16x27xbf16>
    %15 = vector.shape_cast %14 : vector<8x16x27xbf16> to vector<128x27xbf16>
    %c0_2 = arith.constant 0 : index
    %c0_3 = arith.constant 0 : index
    %16 = vector.load %arg3[%c0_2, %c0_3] : memref<27x32xbf16, #tpu.memory_space<vmem>>, vector<27x32xbf16>
    %cst = arith.constant dense<0.000000e+00> : vector<128x32xf32>
    %17 = tpu.matmul %15, %16, %cst {dimension_numbers = #tpu.dot_dimension_numbers<[1], [0], [0], [1], [0, 0, 1, 1], [], []>} : vector<128x27xbf16>, vector<27x32xbf16>, vector<128x32xf32> -> vector<128x32xf32>
    %c0_4 = arith.constant 0 : index
    %c0_5 = arith.constant 0 : index
    %18 = vector.load %arg4[%c0_4, %c0_5] : memref<1x32xf32, #tpu.memory_space<vmem>>, vector<1x32xf32>
    %19 = vector.broadcast %18 : vector<1x32xf32> to vector<128x32xf32>
    %20 = arith.addf %17, %19 : vector<128x32xf32>
    %cst_6 = arith.constant 0.000000e+00 : f32
    %21 = vector.broadcast %cst_6 : f32 to vector<128x32xf32>
    %22 = arith.maximumf %20, %21 : vector<128x32xf32>
    %23 = vector.shape_cast %22 : vector<128x32xf32> to vector<4x2x8x2x32xf32>
    %cst_7 = arith.constant dense<0xFF800000> : vector<4x2x8x32xf32>
    %24 = vector.multi_reduction <maximumf>, %23, %cst_7 [3] : vector<4x2x8x2x32xf32> to vector<4x2x8x32xf32>
    %cst_8 = arith.constant dense<0xFF800000> : vector<4x8x32xf32>
    %25 = vector.multi_reduction <maximumf>, %24, %cst_8 [1] : vector<4x2x8x32xf32> to vector<4x8x32xf32>
    %26 = arith.truncf %25 : vector<4x8x32xf32> to vector<4x8x32xbf16>
    %c0_9 = arith.constant 0 : index
    %c0_10 = arith.constant 0 : index
    %c0_11 = arith.constant 0 : index
    %c0_12 = arith.constant 0 : index
    %27 = vector.load %arg5[%c0_9, %c0_10, %c0_11, %c0_12] : memref<1x4x8x32xbf16, #tpu.memory_space<vmem>>, vector<1x4x8x32xbf16>
    %28 = vector.shape_cast %27 : vector<1x4x8x32xbf16> to vector<4x8x32xbf16>
    %29 = vector.shape_cast %26 : vector<4x8x32xbf16> to vector<1x4x8x32xbf16>
    tpu.vector_store %arg5[%c0_9, %c0_10, %c0_11, %c0_12], %29 {strides = array<i32>} : memref<1x4x8x32xbf16, #tpu.memory_space<vmem>>, vector<1x4x8x32xbf16>,
    return
  }
  func.func @transform_0(%arg0: i32, %arg1: i32) -> (i32, i32, i32, i32) {
    %c0_i32 = arith.constant 0 : i32
    %c0_i32_0 = arith.constant 0 : i32
    %c0_i32_1 = arith.constant 0 : i32
    %c0_i32_2 = arith.constant 0 : i32
    return %arg0, %c0_i32, %c0_i32_0, %c0_i32_1 : i32, i32, i32, i32
  }
  func.func @transform_1(%arg0: i32, %arg1: i32) -> (i32, i32) {
    %c0_i32 = arith.constant 0 : i32
    %c0_i32_0 = arith.constant 0 : i32
    %c0_i32_1 = arith.constant 0 : i32
    return %c0_i32, %c0_i32_0 : i32, i32
  }
  func.func @transform_2(%arg0: i32, %arg1: i32) -> (i32, i32) {
    %c0_i32 = arith.constant 0 : i32
    %c0_i32_0 = arith.constant 0 : i32
    %c0_i32_1 = arith.constant 0 : i32
    return %c0_i32, %c0_i32_0 : i32, i32
  }
  func.func @transform_3(%arg0: i32, %arg1: i32) -> (i32, i32, i32, i32) {
    %c0_i32 = arith.constant 0 : i32
    %c0_i32_0 = arith.constant 0 : i32
    %c0_i32_1 = arith.constant 0 : i32
    return %arg0, %arg1, %c0_i32, %c0_i32_0 : i32, i32, i32, i32
  }
}

</mosaic_0001>

<bundles_post_ra>
// kernel: tpu_custom_call.1
= control target key start
LH: loop header
LB: loop body
LE: loop exit
PB: predicated region body
PF: predicated region fallthrough
CT: control target
= control target key end

     0   :  { %8 = vsyncpa [#allocation3], 0  ;;  %s3348_s0 = inlined_call_operand.vmem [shape: bf16[2,18,18,3], index: 0, kind: input, shape index: {}]   ;;  %s3349_s1 = inlined_call_operand.vmem [shape: bf16[27,32], index: 1, kind: input, shape index: {}]   ;;  %s3350_s2 = inlined_call_operand.vmem [shape: f32[1,32], index: 2, kind: input, shape index: {}]   ;;  %s3351_s3 = inlined_call_operand.hbm [shape: bf16[2,8,8,32], index: 3, kind: output, shape index: {}]  }
   0x1   :  { %10 = vsyncpa [#allocation3 + $0x1], 0  ;;  %s2456_s12 = smov 0   ;;  %s2458_s13 = smov 0  }
   0x2   :  { %s2460_s14 = smov 0   ;;  %s2462_s15 = smov 0  }
   0x3   :  { %s2464_s16 = smov 0   ;;  %s2466_s17 = smov 0  }
   0x4   :  { %s2468_s18 = smov 0   ;;  %s2470_s19 = smov 0  }
   0x5 LB: > { %s2074_s20 = sadd.s32 4294967295, %s2421_s19   ;;  %s2075_s21 = sadd.s32 4294967294, %s2421_s19   ;;  %s2421_s19 = sphi %s2470_s19, %s16_s19   ;;  %s2417_s18 = sphi %s2468_s18, %s3360_s18   ;;  %s2413_s17 = sphi %s2466_s17, %s3359_s17   ;;  %s2409_s16 = sphi %s2464_s16, %s3358_s16   ;;  %s2405_s15 = sphi %s2462_s15, %s3357_s15   ;;  %s2401_s14 = sphi %s2460_s14, %s3356_s14   ;;  %s2397_s13 = sphi %s2458_s13, %s3355_s13   ;;  %s2393_s12 = sphi %s2456_s12, %s3354_s12  }
   0x6   : > { %s25_s22 = sadd.s32 1, %s2413_s17  ;;  %s28_s23 = sadd.s32 1, %s2417_s18 }
   0x7   : > { %p26_p0 = scmp.ge.s32.totalorder %s25_s22, 2  ;;  %p115_p1 = scmp.ne.s32.totalorder %s2401_s14, %s2397_s13 }
   0x8   : > { %p116_p2 = scmp.eq.s32.totalorder %s2074_s20, 3  ;;  %p121_p5 = scmp.ne.s32.totalorder %s2397_s13, %s2393_s12 }
   0x9   : > { %s3362_s22 = smov (%p26_p0, %s25_s22), 0  ;;  %s3364_s23 = smov (!%p26_p0, %s28_s23), %s2417_s18 }
   0xa   : > { %s101_s24 = ssub.s32 %s2413_s17, %s3362_s22  ;;  %p2507_p3 = por %p116_p2, %p115_p1 }
   0xb   : > { %p30_p4 = scmp.ge.s32.totalorder %s3364_s23, 2  ;;  %p122_p6 = scmp.eq.s32.totalorder %s2075_s21, 3 }
   0xc   : > { %p2078_p7 = scmp.ge.s32.totalorder %s2421_s19, 1  ;;  %p154_p9 = scmp.lt.s32.totalorder %s2421_s19, 5 }
   0xd   : > { %s3366_s23 = smov (%p30_p4, %s3364_s23), 0  ;;  %p2516_p8 = por %p122_p6, %p121_p5 }
   0xe   : > { %s100_s27 = ssub.s32 %s2417_s18, %s3366_s23  ;;  %s105_s28 = sadd.s32 1, %s2401_s14 }
   0xf   : > { %s102_s29 = sor.u32 %s101_s24, %s100_s27  ;;  %p155_p10 = pnand %p2078_p7, %p154_p9 }
  0x10   : > { %p103_p11 = scmp.eq.s32.totalorder %s102_s29, 0  ;;  %p178_p12 = scmp.lt.s32.totalorder (!%p155_p10), %s2409_s16, 1  ;;  %vm396_vm0 = vcmask (!%p155_p10), 1046528   ;;  %vm283_vm1 = vsmask.f32 (!%p155_p10), 7424  ;;  %vm754_vm2 = vcmask (!%p155_p10), 1044480  }
  0x11   : > { %158 = sbr.rel (%p155_p10) target bundleno = 635 (0x27b), region = 32  ;;  %s2423_s11 = smov (!%p155_p10), 9   ;;  %vm755_vm3 = vcmask (!%p155_p10), 1045504   ;;  %vm579_vm4 = vcmask (!%p155_p10), 23552   ;;  %vm596_vm5 = vcmask (!%p155_p10), 48128   ;;  %vm630_vm6 = vcmask (!%p155_p10), 97280  }
  0x12   : > { %s2525_s30 = scalar_select %p103_p11, %s2401_s14, %s105_s28  }
  0x13   : > { %s2153_s5 = smul.u32 (!%p155_p10), 96, %s2405_s15  ;;  %s2424_s20 = smov (!%p155_p10), 6   ;;  %vm613_vm7 = vcmask (!%p155_p10), 72704   ;;  %vm647_vm8 = vcmask (!%p155_p10), 121856   ;;  %vm664_vm9 = vcmask (!%p155_p10), 146432   ;;  %vm681_vm10 = vcmask (!%p155_p10), 171008  }
  0x14   : > { %s2425_s21 = smov (!%p155_p10), 3   ;;  %s2426_s24 = smov (!%p155_p10), 12   ;;  %vm698_vm11 = vcmask (!%p155_p10), 195584   ;;  %vm737_vm12 = vcmask (!%p155_p10), 220160   ;;  %vm1226_vm13 = vcmask (!%p155_p10), 254976   ;;  %vm1675_vm14 = vcmask (!%p155_p10), 261120  }
  0x15   : > { %s2427_s27 = smov (!%p155_p10), 15   ;;  %s2428_s28 = smov (!%p155_p10), 18   ;;  %vm1932_vm15 = vcmask (!%p155_p10), 1041409  }
  0x16   : > { %s2430_s7 = smov (!%p155_p10), 21   ;;  %s2431_s8 = smov (!%p155_p10), 24  }
  0x17   : > { %s2149_s29 = sshll.u32 (!%p155_p10), %s2409_s16, 3 }
  0x18   : > { %s179_s4 = scalar_select %p178_p12, %s2409_s16, 1 }
  0x1a   : > { %s2220_s6 = smul.u32 216, %s179_s4 }
  0x1c   : > { %s182_s9 = scalar_lea.vmem %s3348_s0, %s2220_s6 }
  0x1d   : > { %s2533_s10 = scalar_lea.vmem %s182_s9, %s2153_s5 }
  0x1e   : > { %v2536_v0 = vld [vmem:[%s2533_s10 + $0x3c] sm:$0xff]   ;;  %v2539_v1 = vld [vmem:[%s2533_s10 + $0xc] sm:$0xff]   ;;  %v2307_v3 = vld [vmem:[%s2533_s10 + $0x38] ss:$0 sps:$4 sm:$0x11]  }
  0x1f   : > { %450 = vrot.lane.b32.xlu1 %v2536_v0, %s2423_s11  ;;  %442 = vrot.lane.b32.xlu0 %v2539_v1, %s2423_s11  ;;  %v2546_v2 = vld [vmem:[%s2533_s10 + $0x30] sm:$0xff]   ;;  %v2550_v4 = vld [vmem:[%s2533_s10] sm:$0xff]   ;;  %v412_v5 = vrot.slane %v2536_v0, 1  ;;  %v410_v7 = vrot.slane %v2307_v3, 1  ;;  %v400_v9 = vrot.slane %v2539_v1, 1  ;;  %v297_v16 = vshrl.u32 %v2539_v1, 16 }
  0x20   : > { %v409_v6 = vrot.slane %v2546_v2, 1  ;;  %v2309_v8 = vld [vmem:[%s2533_s10 + $0x8] ss:$0 sps:$4 sm:$0x11]   ;;  %v397_v10 = vrot.slane %v2550_v4, 1  ;;  %v299_v17 = vshll.u32 %v2539_v1, 16 }
  0x21   : > { %v2310_v11 = vld [vmem:[%s2533_s10 + $0x44] ss:$0 sps:$4 sm:$0x11]   ;;  %v398_v13 = vrot.slane %v2309_v8, 1  ;;  %v285_v18 = vshrl.u32 %v2550_v4, 16  ;;  %v287_v22 = vshll.u32 %v2550_v4, 16 }
  0x22   : > { %v2559_v12 = vsel %vm396_vm0, %v409_v6, %v410_v7  ;;  %v2311_v14 = vld [vmem:[%s2533_s10 + $0x14] ss:$0 sps:$4 sm:$0x11]   ;;  %v413_v15 = vrot.slane %v2310_v11, 1  ;;  %v301_v24 = vrot.slane %v299_v17, 1  ;;  %v292_v25 = vshll.u32 %v2309_v8, 16 }
  0x23   : > { %429 = vrot.lane.b32.xlu1 %v2559_v12, %s2424_s20  ;;  %v399_v19 = vsel %vm396_vm0, %v397_v10, %v398_v13  ;;  %v401_v20 = vrot.slane %v2311_v14, 1  ;;  %v304_v21 = vshll.u32 %v2311_v14, 16  ;;  %v345_v26 = vshrl.u32 %v2536_v0, 16  ;;  %v2583_v39 = vld [vmem:[%s2533_s10 + $0x48] sm:$0xff]   ;;  %v2590_v46 = vld [vmem:[%s2533_s10 + $0x18] sm:$0xff]   ;;  %v2608_v57 = vld [vmem:[%s2533_s10 + $0x60] sm:$0xff]  }
  0x24   : > { %421 = vrot.lane.b32.xlu0 %v399_v19, %s2424_s20  ;;  %v2571_v23 = vsel %vm396_vm0, %v412_v5, %v413_v15  ;;  %v289_v29 = vrot.slane %v287_v22, 1  ;;  %v347_v30 = vshll.u32 %v2536_v0, 16  ;;  %v302_v31 = vor.u32 %v301_v24, %v297_v16  ;;  %v2314_v47 = vld [vmem:[%s2533_s10 + $0x50] ss:$0 sps:$4 sm:$0x11]  }
  0x25   : > { %v2575_v27 = vsel %vm396_vm0, %v400_v9, %v401_v20  ;;  %v306_v28 = vrot.slane %v304_v21, 1  ;;  %v294_v32 = vrot.slane %v292_v25, 1  ;;  %v352_v33 = vshll.u32 %v2310_v11, 16  ;;  %v2315_v51 = vld [vmem:[%s2533_s10 + $0x20] ss:$0 sps:$4 sm:$0x11]  }
  0x26   : > { %v333_v34 = vshrl.u32 %v2546_v2, 16  ;;  %v290_v35 = vor.u32 %v289_v29, %v285_v18  ;;  %v349_v36 = vrot.slane %v347_v30, 1  ;;  %v335_v37 = vshll.u32 %v2546_v2, 16  ;;  %v2616_v61 = vld [vmem:[%s2533_s10 + $0x6c] sm:$0xff]  }
  0x27   : > { %431 = vrot.lane.b32.xlu1 %v2571_v23, %s2424_s20  ;;  %v340_v38 = vshll.u32 %v2307_v3, 16  ;;  %v307_v40 = vsel %vm283_vm1, %v302_v31, %v306_v28  ;;  %v354_v41 = vrot.slane %v352_v33, 1  ;;  %v359_v50 = vshll.u32 %v2583_v39, 16  ;;  %v2321_v3 = vld [vmem:[%s2533_s10 + $0x68] ss:$0 sps:$4 sm:$0x11]  }
  0x28   : > { %423 = vrot.lane.b32.xlu0 %v2575_v27, %s2424_s20  ;;  %v295_v42 = vsel %vm283_vm1, %v290_v35, %v294_v32  ;;  %v350_v43 = vor.u32 %v349_v36, %v345_v26  ;;  %v337_v44 = vrot.slane %v335_v37, 1  ;;  %v311_v53 = vshll.u32 %v2590_v46, 16  ;;  %v2323_v15 = vld [vmem:[%s2533_s10 + $0x74] ss:$0 sps:$4 sm:$0x11]  }
  0x29   : > { %v342_v45 = vrot.slane %v340_v38, 1  ;;  %v357_v54 = vshrl.u32 %v2583_v39, 16  ;;  %v361_v55 = vrot.slane %v359_v50, 1  ;;  %v364_v56 = vshll.u32 %v2314_v47, 16  ;;  %v2661_v38 = vld [vmem:[%s2533_s10 + $0x54] sm:$0xff]  }
  0x2a   : > { %v2595_v48 = vsel %vm283_vm1, %v350_v43, %v354_v41  ;;  %v338_v49 = vor.u32 %v337_v44, %v333_v34  ;;  %v316_v58 = vshll.u32 %v2315_v51, 16  ;;  %v309_v59 = vshrl.u32 %v2590_v46, 16  ;;  %v2667_v41 = vld [vmem:[%s2533_s10 + $0x24] sm:$0xff]   ;;  %v2319_v44 = vld [vmem:[%s2533_s10 + $0x2c] ss:$0 sps:$4 sm:$0x11]  }
  0x2b   : > { %382 = vrot.lane.b32.xlu1 %v307_v40, %s2425_s21  ;;  %v313_v60 = vrot.slane %v311_v53, 1  ;;  %v362_v62 = vor.u32 %v361_v55, %v357_v54  ;;  %v366_v63 = vrot.slane %v364_v56, 1  ;;  %v462_v5 = vshrl.u32 %v2608_v57, 16  ;;  %v2324_v54 = vld [vmem:[%s3349_s1] sm:$0xff]  }
  0x2c   : > { %380 = vrot.lane.b32.xlu0 %v295_v42, %s2425_s21  ;;  %v2601_v52 = vsel %vm283_vm1, %v338_v49, %v342_v45  ;;  %v464_v6 = vshll.u32 %v2608_v57, 16  ;;  %v318_v7 = vrot.slane %v316_v58, 1  ;;  %v489_v8 = vrot.slane %v2608_v57, 1  ;;  %v2318_v42 = vld [vmem:[%s2533_s10 + $0x5c] ss:$0 sps:$4 sm:$0x11]   ;;  %2196 = vmatprep.subr.bf16.mxu0 %v2324_v54 }
  0x2d   : > { %v314_v9 = vor.u32 %v313_v60, %v309_v59  ;;  %v469_v11 = vshll.u32 %v2321_v3, 16  ;;  %v533_v13 = vshrl.u32 %v2616_v61, 16  ;;  %v490_v14 = vrot.slane %v2321_v3, 1  ;;  %v2325_v58 = vld [vmem:[%s3349_s1 + $0x8] sm:$0x3f]   ;;  %2216 = vmatprep.subr.bf16.mxu1 %v2324_v54  ;;  %2197 = vmatpush3.bf16.msra.mxu0 %v2324_v54  ;;  %s2433_s10 = smov [#allocation2]  }
  0x2e   : > { %v466_v10 = vrot.slane %v464_v6, 1  ;;  %v535_v16 = vshll.u32 %v2616_v61, 16  ;;  %v560_v17 = vrot.slane %v2616_v61, 1  ;;  %v2631_v18 = vsel %vm283_vm1, %v362_v62, %v366_v63  ;;  %2218 = vmatpush3.bf16.msra.mxu1 %v2324_v54 }
  0x2f   : > { %390 = vrot.lane.b32.xlu1 %v2595_v48, %s2425_s21  ;;  %v471_v20 = vrot.slane %v469_v11, 1  ;;  %v2635_v21 = vsel %vm396_vm0, %v489_v8, %v490_v14  ;;  %v540_v24 = vshll.u32 %v2323_v15, 16  ;;  %v561_v25 = vrot.slane %v2323_v15, 1 }
  0x30   : > { %388 = vrot.lane.b32.xlu0 %v2601_v52, %s2425_s21  ;;  %v467_v19 = vor.u32 %v466_v10, %v462_v5  ;;  %v537_v22 = vrot.slane %v535_v16, 1  ;;  %v2638_v26 = vsel %vm283_vm1, %v314_v9, %v318_v7  ;;  %v415_v32 = vrot.slane %v2583_v39, 1 }
  0x31   : > { %v542_v30 = vrot.slane %v540_v24, 1  ;;  %v2646_v31 = vsel %vm396_vm0, %v560_v17, %v561_v25  ;;  %v416_v33 = vrot.slane %v2314_v47, 1  ;;  %v403_v35 = vrot.slane %v2590_v46, 1 }
  0x32   : > { %v2641_v28 = vsel %vm283_vm1, %v467_v19, %v471_v20  ;;  %v538_v29 = vor.u32 %v537_v22, %v533_v13  ;;  %v404_v36 = vrot.slane %v2315_v51, 1  ;;  %v371_v43 = vshll.u32 %v2661_v38, 16 }
  0x33   : > { %452 = vrot.lane.b32.xlu1 %v2583_v39, %s2423_s11  ;;  %v2658_v37 = vsel %vm396_vm0, %v415_v32, %v416_v33  ;;  %v323_v45 = vshll.u32 %v2667_v41, 16  ;;  %v376_v49 = vshll.u32 %v2318_v42, 16  ;;  %v321_v50 = vshrl.u32 %v2667_v41, 16 }
  0x34   : > { %444 = vrot.lane.b32.xlu0 %v2590_v46, %s2423_s11  ;;  %v2652_v34 = vsel %vm283_vm1, %v538_v29, %v542_v30  ;;  %v373_v47 = vrot.slane %v371_v43, 1  ;;  %v328_v53 = vshll.u32 %v2319_v44, 16  ;;  %v2429_v59 = vmov 65535  }
  0x35   : > { %v325_v51 = vrot.slane %v323_v45, 1  ;;  %v378_v56 = vrot.slane %v376_v49, 1  ;;  %v756_v60 = vsel %vm754_vm2, 4294967295, %v2429_v59  ;;  %v418_v8 = vrot.slane %v2661_v38, 1 }
  0x36   : > { %v330_v63 = vrot.slane %v328_v53, 1  ;;  %v757_v3 = vsel %vm755_vm3, %v756_v60, 0  ;;  %v419_v9 = vrot.slane %v2318_v42, 1  ;;  %v406_v10 = vrot.slane %v2667_v41, 1 }
  0x37   : > { %481 = vrot.lane.b32.xlu1 %v2595_v48, %s2426_s24  ;;  %v326_v62 = vor.u32 %v325_v51, %v321_v50  ;;  %v759_v5 = vand.u32 %v2325_v58, %v757_v3  ;;  %v407_v11 = vrot.slane %v2319_v44, 1  ;;  %vm1938_vm2 = vcmask 1044484  }
  0x38   : > { %473 = vrot.lane.b32.xlu0 %v307_v40, %s2426_s24  ;;  %v405_v40 = vsel %vm396_vm0, %v403_v35, %v404_v36  ;;  %v420_v13 = vsel %vm396_vm0, %v418_v8, %v419_v9  ;;  %vm1940_vm3 = vcmask 1045509  }
  0x39   : > { %2198 = vmatprep.subr.bf16.mxu0 %v759_v5  ;;  %v331_v7 = vsel %vm283_vm1, %v326_v62, %v330_v63  ;;  %2217 = vmatprep.subr.bf16.mxu1 %v759_v5  ;;  %v408_v14 = vsel %vm396_vm0, %v406_v10, %v407_v11  ;;  %vm1934_vm0 = vcmask 1042434  }
  0x3a   : > { %2199 = vmatpush3.bf16.msra.mxu0 %v759_v5  ;;  %2219 = vmatpush3.bf16.msra.mxu1 %v759_v5 }
  0x3b   : > { %483 = vrot.lane.b32.xlu1 %v2631_v18, %s2426_s24 }
  0x3c   : > { %475 = vrot.lane.b32.xlu0 %v2638_v26, %s2426_s24 }
  0x3f   : > { %500 = vrot.lane.b32.xlu1 %v2571_v23, %s2427_s27 }
  0x40   : > { %492 = vrot.lane.b32.xlu0 %v2575_v27, %s2427_s27  ;;  %v369_v27 = vshrl.u32 %v2661_v38, 16 }
  0x42   : > { %v374_v55 = vor.u32 %v373_v47, %v369_v27 }
  0x43   : > { %502 = vrot.lane.b32.xlu1 %v2658_v37, %s2427_s27 }
  0x44   : > { %494 = vrot.lane.b32.xlu0 %v405_v40, %s2427_s27  ;;  %v379_v6 = vsel %vm283_vm1, %v374_v55, %v378_v56  ;;  %vm1936_vm1 = vcmask 1043459  }
  0x47   : > { %521 = vrot.lane.b32.xlu1 %v2583_v39, %s2428_s28 }
  0x48   : > { %513 = vrot.lane.b32.xlu0 %v2590_v46, %s2428_s28 }
  0x4b   : > { %523 = vrot.lane.b32.xlu1 %v2661_v38, %s2428_s28 }
  0x4c   : > { %515 = vrot.lane.b32.xlu0 %v2667_v41, %s2428_s28 }
  0x4f   : > { %552 = vrot.lane.b32.xlu1 %v2631_v18, %s2430_s7 }
  0x50   : > { %544 = vrot.lane.b32.xlu0 %v2638_v26, %s2430_s7 }
  0x53   : > { %554 = vrot.lane.b32.xlu1 %v379_v6, %s2430_s7 }
  0x54   : > { %546 = vrot.lane.b32.xlu0 %v331_v7, %s2430_s7 }
  0x57   : > { %571 = vrot.lane.b32.xlu1 %v2658_v37, %s2431_s8 }
  0x58   : > { %563 = vrot.lane.b32.xlu0 %v405_v40, %s2431_s8 }
  0x5b   : > { %392 = vrot.lane.b32.xlu1 %v2631_v18, %s2425_s21 }
  0x5c   : > { %384 = vrot.lane.b32.xlu0 %v2638_v26, %s2425_s21 }
  0x5f   : > { %573 = vrot.lane.b32.xlu1 %v420_v13, %s2431_s8 }
  0x60   : > { %565 = vrot.lane.b32.xlu0 %v408_v14, %s2431_s8 }
  0x63   : > { %394 = vrot.lane.b32.xlu1 %v379_v6, %s2425_s21 }
  0x64   : > { %386 = vrot.lane.b32.xlu0 %v331_v7, %s2425_s21  ;;  %s175_s21 = sand.u32 1, %s2397_s13  }
  0x67   : > { %433 = vrot.lane.b32.xlu1 %v2658_v37, %s2424_s20 }
  0x68   : > { %425 = vrot.lane.b32.xlu0 %v405_v40, %s2424_s20 }
  0x6b   : > { %435 = vrot.lane.b32.xlu1 %v420_v13, %s2424_s20 }
  0x6c   : > { %427 = vrot.lane.b32.xlu0 %v408_v14, %s2424_s20 }
  0x6f   : > { %454 = vrot.lane.b32.xlu1 %v2661_v38, %s2423_s11 }
  0x70   : > { %446 = vrot.lane.b32.xlu0 %v2667_v41, %s2423_s11 }
  0x73   : > { %456 = vrot.lane.b32.xlu1 %v2608_v57, %s2423_s11 }
  0x74   : > { %448 = vrot.lane.b32.xlu0 %v2546_v2, %s2423_s11  ;;  %s2331_s11 = sshll.u32 %s2433_s10, 4  ;;  %s2332_s11 = int_to_ptr.vmem [resolvable:$false] %s2331_s11 }
  0x75   : > { %s2333_s20 = scalar_lea.vmem %s2332_s11, 512 }
  0x77   : > { %485 = vrot.lane.b32.xlu1 %v379_v6, %s2426_s24 }
  0x78   : > { %477 = vrot.lane.b32.xlu0 %v331_v7, %s2426_s24 }
  0x7b   : > { %487 = vrot.lane.b32.xlu1 %v2641_v28, %s2426_s24 }
  0x7c   : > { %479 = vrot.lane.b32.xlu0 %v2601_v52, %s2426_s24  ;;  %s2079_s24 = sshll.u32 %s175_s21, 4 }
  0x7f   : > { %504 = vrot.lane.b32.xlu1 %v420_v13, %s2427_s27 }
  0x80   : > { %496 = vrot.lane.b32.xlu0 %v408_v14, %s2427_s27 }
  0x83   : > { %506 = vrot.lane.b32.xlu1 %v2635_v21, %s2427_s27 }
  0x84   : > { %498 = vrot.lane.b32.xlu0 %v2559_v12, %s2427_s27  ;;  %s3233_s27 = scalar_lea.vmem [#allocation2], %s2079_s24 }
  0x87   : > { %525 = vrot.lane.b32.xlu1 %v2608_v57, %s2428_s28 }
  0x88   : > { %517 = vrot.lane.b32.xlu0 %v2546_v2, %s2428_s28 }
  0x8b   : > { %527 = vrot.lane.b32.xlu1 %v2616_v61, %s2428_s28 }
  0x8c   : > { %519 = vrot.lane.b32.xlu0 %v2536_v0, %s2428_s28  ;;  %s2148_s28 = sshll.u32 %s2405_s15, 2  ;;  %s1996_s15 = sshll.u32 %s3233_s27, 4  ;;  %s3285_s15 = int_to_ptr.vmem [resolvable:$true] %s1996_s15 }
  0x8d   : > { %s1993_s4 = sadd.s32 %s2149_s29, %s2148_s28  ;;  %s2327_s9 = scalar_lea.vmem %s3285_s15, 256 }
  0x8e   : > { %s2150_s16 = sshll.u32 %s1993_s4, 6  ;;  %p2328_p13 = scmp.ne.s32.totalorder %s3285_s15, %s2327_s9 }
  0x8f   : > { %556 = vrot.lane.b32.xlu1 %v2641_v28, %s2430_s7  ;;  %p2334_p2 = scmp.lt.s32.totalorder %s3285_s15, %s2332_s11  ;;  %p2335_p4 = scmp.lt.s32.totalorder %s2333_s20, %s2327_s9 }
  0x90   : > { %548 = vrot.lane.b32.xlu0 %v2601_v52, %s2430_s7  ;;  %p2329_p0 = pnand %p2328_p13, %p2507_p3 }
  0x91   : > { %v451_v15 = vpop.permute.xlu1 %450  ;;  %v443_v16 = vpop.permute.xlu0 %442  ;;  %p2336_p5 = por %p2335_p4, %p2334_p2 }
  0x92   : > { %p2330_p1 = pneg %p2329_p0 }
  0x93   : > { %558 = vrot.lane.b32.xlu1 %v2652_v34, %s2430_s7 }
  0x94   : > { %550 = vrot.lane.b32.xlu0 %v2595_v48, %s2430_s7  ;;  %s3290_s7 = scalar_lea.hbm %s3351_s3, %s2150_s16  ;;  %p2337_p6 = pnand %p2336_p5, %p2330_p1 }
  0x95   : > { %v430_v57 = vpop.permute.xlu1 %429 }
  0x96   : > { %v422_v17 = vpop.permute.xlu0 %421 }
  0x97   : > { %575 = vrot.lane.b32.xlu1 %v2635_v21, %s2431_s8 }
  0x98   : > { %567 = vrot.lane.b32.xlu0 %v2559_v12, %s2431_s8 }
  0x99   : > { %v432_v61 = vpop.permute.xlu1 %431 }
  0x9a   : > { %v424_v18 = vpop.permute.xlu0 %423 }
  0x9b   : > { %577 = vrot.lane.b32.xlu1 %v2646_v31, %s2431_s8 }
  0x9c   : > { %569 = vrot.lane.b32.xlu0 %v2571_v23, %s2431_s8  ;;  %s3296_s8 = scalar_lea.sflag [#allocation3], %s175_s21 }
  0x9d   : > { %v383_v52 = vpop.permute.xlu1 %382 }
  0x9e   : > { %v381_v19 = vpop.permute.xlu0 %380  ;;  %v583_v59 = vsel %vm579_vm4, %v2539_v1, %v383_v52 }
  0x9f   : > { %v581_v36 = vsel %vm579_vm4, %v2550_v4, %v381_v19  ;;  %v600_v6 = vsel %vm596_vm5, %v583_v59, %v424_v18 }
  0xa0   : > { %v598_v43 = vsel %vm596_vm5, %v581_v36, %v422_v17 }
  0xa1   : > { %v391_v20 = vpop.permute.xlu1 %390  ;;  %v615_v27 = vsel %vm613_vm7, %v598_v43, %v443_v16 }
  0xa2   : > { %v389_v48 = vpop.permute.xlu0 %388  ;;  %v591_v51 = vsel %vm579_vm4, %v2536_v0, %v391_v20 }
  0xa3   : > { %v589_v23 = vsel %vm579_vm4, %v2546_v2, %v389_v48  ;;  %v608_v63 = vsel %vm596_vm5, %v591_v51, %v432_v61 }
  0xa4   : > { %v606_v40 = vsel %vm596_vm5, %v589_v23, %v430_v57 }
  0xa5   : > { %v453_v22 = vpop.permute.xlu1 %452  ;;  %v623_v44 = vsel %vm613_vm7, %v606_v40, %v451_v15 }
  0xa6   : > { %v445_v24 = vpop.permute.xlu0 %444  ;;  %v625_v3 = vsel %vm613_vm7, %v608_v63, %v453_v22 }
  0xa7   : > { %v617_v1 = vsel %vm613_vm7, %v600_v6, %v445_v24 }
  0xa9   : > { %v482_v25 = vpop.permute.xlu1 %481 }
  0xaa   : > { %v474_v26 = vpop.permute.xlu0 %473  ;;  %v640_v2 = vsel %vm630_vm6, %v623_v44, %v482_v25 }
  0xab   : > { %v632_v49 = vsel %vm630_vm6, %v615_v27, %v474_v26 }
  0xad   : > { %v484_v21 = vpop.permute.xlu1 %483 }
  0xae   : > { %v476_v28 = vpop.permute.xlu0 %475  ;;  %v642_v7 = vsel %vm630_vm6, %v625_v3, %v484_v21 }
  0xaf   : > { %v634_v10 = vsel %vm630_vm6, %v617_v1, %v476_v28 }
  0xb1   : > { %v501_v29 = vpop.permute.xlu1 %500 }
  0xb2   : > { %v493_v12 = vpop.permute.xlu0 %492  ;;  %v657_v4 = vsel %vm647_vm8, %v640_v2, %v501_v29 }
  0xb3   : > { %v649_v53 = vsel %vm647_vm8, %v632_v49, %v493_v12 }
  0xb5   : > { %v503_v30 = vpop.permute.xlu1 %502 }
  0xb6   : > { %v495_v32 = vpop.permute.xlu0 %494  ;;  %v659_v8 = vsel %vm647_vm8, %v642_v7, %v503_v30 }
  0xb7   : > { %v651_v13 = vsel %vm647_vm8, %v634_v10, %v495_v32 }
  0xb9   : > { %v522_v33 = vpop.permute.xlu1 %521 }
  0xba   : > { %v514_v34 = vpop.permute.xlu0 %513  ;;  %v674_v50 = vsel %vm664_vm9, %v657_v4, %v522_v33 }
  0xbb   : > { %v666_v56 = vsel %vm664_vm9, %v649_v53, %v514_v34 }
  0xbd   : > { %v524_v31 = vpop.permute.xlu1 %523 }
  0xbe   : > { %v516_v35 = vpop.permute.xlu0 %515  ;;  %v676_v11 = vsel %vm664_vm9, %v659_v8, %v524_v31 }
  0xbf   : > { %v668_v16 = vsel %vm664_vm9, %v651_v13, %v516_v35 }
  0xc1   : > { %v553_v37 = vpop.permute.xlu1 %552 }
  0xc2   : > { %v545_v42 = vpop.permute.xlu0 %544  ;;  %v691_v54 = vsel %vm681_vm10, %v674_v50, %v553_v37 }
  0xc3   : > { %v683_v60 = vsel %vm681_vm10, %v666_v56, %v545_v42 }
  0xc5   : > { %v555_v45 = vpop.permute.xlu1 %554 }
  0xc6   : > { %v547_v47 = vpop.permute.xlu0 %546  ;;  %v693_v14 = vsel %vm681_vm10, %v676_v11, %v555_v45 }
  0xc7   : > { %v685_v17 = vsel %vm681_vm10, %v668_v16, %v547_v47 }
  0xc9   : > { %v572_v55 = vpop.permute.xlu1 %571 }
  0xca   : > { %v708_v58 = vsel %vm698_vm11, %v691_v54, %v572_v55  ;;  %v564_v62 = vpop.permute.xlu0 %563 }
  0xcb   : > { %2208 = vmatprep.mubr.msk.bf16.mxu1 %vm737_vm12, %v708_v58  ;;  %v700_v0 = vsel %vm698_vm11, %v683_v60, %v564_v62 }
  0xcc   : > { %2200 = vmatprep.mubr.msk.bf16.mxu0 %vm737_vm12, %v700_v0 }
  0xcd   : > { %v393_v5 = vpop.permute.xlu1 %392 }
  0xce   : > { %v385_v9 = vpop.permute.xlu0 %384  ;;  %v593_v43 = vsel %vm579_vm4, %v2583_v39, %v393_v5 }
  0xcf   : > { %v585_v2 = vsel %vm579_vm4, %v2590_v46, %v385_v9 }
  0xd1   : > { %v574_v15 = vpop.permute.xlu1 %573 }
  0xd2   : > { %v710_v57 = vsel %vm698_vm11, %v693_v14, %v574_v15  ;;  %v566_v61 = vpop.permute.xlu0 %565 }
  0xd3   : > { %2209 = vmatmul.mubr.msk.bf16.vlgmr.msra.gmra.mrb[0].mxu1 %vm737_vm12, %v710_v57  ;;  %v702_v18 = vsel %vm698_vm11, %v685_v17, %v566_v61  ;;  %v2432_v61 = vmov 1983009808  }
  0xd4   : > { %2201 = vmatmul.mubr.msk.bf16.vlgmr.msra.gmra.mrb[0].mxu0 %vm737_vm12, %v702_v18  ;;  %v892_v18 = vunpack.c.l.s4 %v2432_v61 }
  0xd5   : > { %v395_v52 = vpop.permute.xlu1 %394 }
  0xd6   : > { %v387_v19 = vpop.permute.xlu0 %386  ;;  %v595_v50 = vsel %vm579_vm4, %v2661_v38, %v395_v52  ;;  %v894_v52 = vlaneseq }
  0xd7   : > { %v587_v56 = vsel %vm579_vm4, %v2667_v41, %v387_v19  ;;  %v893_v19 = vunpack.c.0.s8 %v892_v18  ;;  %vm1942_vm4 = vcmask 1046534  }
  0xd9   : > { %v434_v20 = vpop.permute.xlu1 %433 }
  0xda   : > { %v426_v48 = vpop.permute.xlu0 %425  ;;  %v610_v45 = vsel %vm596_vm5, %v593_v43, %v434_v20  ;;  %v895_v20 = vshrl.u32 %v894_v52, 7 }
  0xdb   : > { %v602_v47 = vsel %vm596_vm5, %v585_v2, %v426_v48  ;;  %v2847_v48 = vld [vmem:[%s3350_s2] ss:$0 sm:$0xff] }
  0xdd   : > { %v436_v22 = vpop.permute.xlu1 %435 }
  0xde   : > { %v428_v24 = vpop.permute.xlu0 %427  ;;  %v612_v54 = vsel %vm596_vm5, %v595_v50, %v436_v22 }
  0xdf   : > { %v604_v62 = vsel %vm596_vm5, %v587_v56, %v428_v24  ;;  %v2849_v24 = vsub.s32 %v893_v19, %v895_v20  ;;  %vm1944_vm5 = vcmask 1047559  }
  0xe1   : > { %v455_v25 = vpop.permute.xlu1 %454 }
  0xe2   : > { %v447_v26 = vpop.permute.xlu0 %446  ;;  %v627_v27 = vsel %vm613_vm7, %v610_v45, %v455_v25 }
  0xe3   : > { %v619_v51 = vsel %vm613_vm7, %v602_v47, %v447_v26 }
  0xe5   : > { %v457_v21 = vpop.permute.xlu1 %456 }
  0xe6   : > { %v449_v28 = vpop.permute.xlu0 %448  ;;  %v629_v58 = vsel %vm613_vm7, %v612_v54, %v457_v21 }
  0xe7   : > { %v621_v5 = vsel %vm613_vm7, %v604_v62, %v449_v28 }
  0xe9   : > { %v486_v29 = vpop.permute.xlu1 %485 }
  0xea   : > { %v478_v12 = vpop.permute.xlu0 %477  ;;  %v644_v49 = vsel %vm630_vm6, %v627_v27, %v486_v29 }
  0xeb   : > { %v636_v55 = vsel %vm630_vm6, %v619_v51, %v478_v12 }
  0xed   : > { %v488_v30 = vpop.permute.xlu1 %487 }
  0xee   : > { %v480_v32 = vpop.permute.xlu0 %479  ;;  %v646_v63 = vsel %vm630_vm6, %v629_v58, %v488_v30 }
  0xef   : > { %v638_v1 = vsel %vm630_vm6, %v621_v5, %v480_v32  ;;  %vm1975_vm6 = vcmask 257024  }
  0xf1   : > { %v505_v33 = vpop.permute.xlu1 %504 }
  0xf2   : > { %v497_v34 = vpop.permute.xlu0 %496  ;;  %v661_v39 = vsel %vm647_vm8, %v644_v49, %v505_v33 }
  0xf3   : > { %v653_v59 = vsel %vm647_vm8, %v636_v55, %v497_v34 }
  0xf5   : > { %v507_v31 = vpop.permute.xlu1 %506 }
  0xf6   : > { %v499_v23 = vpop.permute.xlu0 %498  ;;  %v663_v6 = vsel %vm647_vm8, %v646_v63, %v507_v31 }
  0xf7   : > { %v655_v10 = vsel %vm647_vm8, %v638_v1, %v499_v23 }
  0xf9   : > { %v526_v35 = vpop.permute.xlu1 %525 }
  0xfa   : > { %v518_v36 = vpop.permute.xlu0 %517  ;;  %v678_v46 = vsel %vm664_vm9, %v661_v39, %v526_v35 }
  0xfb   : > { %v670_v0 = vsel %vm664_vm9, %v653_v59, %v518_v36 }
  0xfd   : > { %v528_v37 = vpop.permute.xlu1 %527 }
  0xfe   : > { %v520_v40 = vpop.permute.xlu0 %519  ;;  %v680_v8 = vsel %vm664_vm9, %v663_v6, %v528_v37 }
  0xff   : > { %v672_v14 = vsel %vm664_vm9, %v655_v10, %v520_v40 }
 0x101   : > { %v557_v42 = vpop.permute.xlu1 %556 }
 0x102   : > { %v549_v44 = vpop.permute.xlu0 %548  ;;  %v695_v38 = vsel %vm681_vm10, %v678_v46, %v557_v42 }
 0x103   : > { %v687_v41 = vsel %vm681_vm10, %v670_v0, %v549_v44 }
 0x105   : > { %v559_v4 = vpop.permute.xlu1 %558 }
 0x106   : > { %v551_v53 = vpop.permute.xlu0 %550  ;;  %v697_v11 = vsel %vm681_vm10, %v680_v8, %v559_v4 }
 0x107   : > { %v689_v16 = vsel %vm681_vm10, %v672_v14, %v551_v53 }
 0x109   : > { %v576_v60 = vpop.permute.xlu1 %575 }
 0x10a   : > { %v712_v3 = vsel %vm698_vm11, %v695_v38, %v576_v60  ;;  %v568_v7 = vpop.permute.xlu0 %567 }
 0x10b   : > { %2212 = vmatprep.mubr.msk.bf16.mxu1 %vm737_vm12, %v712_v3  ;;  %v704_v9 = vsel %vm698_vm11, %v687_v41, %v568_v7 }
 0x10c   : > { %2204 = vmatprep.mubr.msk.bf16.mxu0 %vm737_vm12, %v704_v9 }
 0x10d   : > { %v578_v13 = vpop.permute.xlu1 %577 }
 0x10e   : > { %v714_v15 = vsel %vm698_vm11, %v697_v11, %v578_v13  ;;  %v570_v57 = vpop.permute.xlu0 %569 }
 0x10f   : > { %2213 = vmatmul.mubr.msk.bf16.gmra.mrb[4].mxu1 %vm737_vm12, %v714_v15  ;;  %v706_v17 = vsel %vm698_vm11, %v689_v16, %v570_v57 }
 0x110   : > { %2205 = vmatmul.mubr.msk.bf16.gmra.mrb[4].mxu0 %vm737_vm12, %v706_v17 }
 0x1a6   : > { %v2210_v22 = vpop.f32.mrb[0].mxu1 }
 0x1a7   : > { %v836_v25 = vadd.f32 %v2210_v22, %v2847_v48  ;;  %v827_v26 = vpop.f32.mrb[1].mxu1  ;;  %v2202_v21 = vpop.f32.mrb[0].mxu0 }
 0x1a8   : > { %v828_v28 = vadd.f32 %v2847_v48, %v827_v26  ;;  %v2211_v29 = vpop.f32.mrb[2].mxu1  ;;  %v804_v12 = vadd.f32 %v2202_v21, %v2847_v48  ;;  %v795_v32 = vpop.f32.mrb[1].mxu0 }
 0x1a9   : > { %v868_v30 = vmax.f32 %v836_v25, 0.0  ;;  %v839_v33 = vadd.f32 %v2211_v29, %v2847_v48  ;;  %v830_v34 = vpop.f32.mrb[3].mxu1  ;;  %v796_v31 = vadd.f32 %v2847_v48, %v795_v32  ;;  %v2203_v35 = vpop.f32.mrb[2].mxu0 }
 0x1aa   : > { %v866_v23 = vmax.f32 %v828_v28, 0.0  ;;  %v2857_v36 = vadd.f32 %v2847_v48, %v830_v34  ;;  %v860_v37 = vmax.f32 %v804_v12, 0.0  ;;  %v2861_v43 = vadd.f32 %v2203_v35, %v2847_v48  ;;  %v2863_v44 = vpop.f32.mrb[3].mxu0 }
 0x1ab   : > { %v1060_v40 = vcombine.high %v868_v30, %v868_v30  ;;  %v1067_v42 = vrot.slane %v868_v30, %v2849_v24  ;;  %v2865_v45 = vmax.f32 %v796_v31, 0.0  ;;  %v2870_v4 = vmax.f32 %v839_v33, 0.0 }
 0x1ac   : > { %v1026_v2 = vcombine.high %v866_v23, %v866_v23  ;;  %v2868_v27 = vrot.slane %v866_v23, %v2849_v24  ;;  %v924_v47 = vcombine.high %v860_v37, %v860_v37  ;;  %v931_v49 = vrot.slane %v860_v37, %v2849_v24 }
 0x1ad   : > { %v1074_v50 = vrot.slane %v1060_v40, %v2849_v24  ;;  %v1075_v51 = vcombine.high %v1067_v42, %v1067_v42  ;;  %v1507_v39 = vsel %vm1226_vm13, %v1067_v42, -inf  ;;  %v890_v53 = vcombine.high %v2865_v45, %v2865_v45 }
 0x1ae   : > { %v2879_v54 = vrot.slane %v2865_v45, %v2849_v24  ;;  %v2882_v55 = vrot.slane %v1026_v2, %v2849_v24  ;;  %v938_v46 = vrot.slane %v924_v47, %v2849_v24  ;;  %v939_v56 = vcombine.high %v931_v49, %v931_v49 }
 0x1af   : > { %v1283_v58 = vsel %vm1226_vm13, %v931_v49, -inf  ;;  %v1076_v59 = vcombine.high %v1074_v50, %v1074_v50  ;;  %v1508_v60 = vrot.slane %v1507_v39, 4  ;;  %v1514_v62 = vsel %vm1226_vm13, %v1075_v51, -inf }
 0x1b0   : > { %v1284_v38 = vrot.slane %v1283_v58, 4  ;;  %v1521_v63 = vsel %vm1226_vm13, %v1074_v50, -inf  ;;  %v940_v0 = vcombine.high %v938_v46, %v938_v46  ;;  %v1290_v3 = vsel %vm1226_vm13, %v939_v56, -inf }
 0x1b1   : > { %v1297_v5 = vsel %vm1226_vm13, %v938_v46, -inf  ;;  %v1515_v6 = vrot.slane %v1514_v62, 4  ;;  %v1291_v7 = vrot.slane %v1290_v3, 4  ;;  %v1509_v8 = vmax.f32 %v1507_v39, %v1508_v60 }
 0x1b2   : > { %v1285_v41 = vmax.f32 %v1283_v58, %v1284_v38  ;;  %v1298_v1 = vrot.slane %v1297_v5, 4  ;;  %v1304_v9 = vsel %vm1226_vm13, %v940_v0, -inf  ;;  %v1522_v11 = vrot.slane %v1521_v63, 4 }
 0x1b3   : > { %v1516_v10 = vmax.f32 %v1514_v62, %v1515_v6  ;;  %v1528_v13 = vsel %vm1226_vm13, %v1076_v59, -inf  ;;  %v1292_v15 = vmax.f32 %v1290_v3, %v1291_v7  ;;  %v1305_v57 = vrot.slane %v1304_v9, 4 }
 0x1b4   : > { %v1286_v14 = vrot.slane %v1285_v41, 2  ;;  %v1299_v16 = vmax.f32 %v1297_v5, %v1298_v1  ;;  %v1510_v17 = vrot.slane %v1509_v8, 2  ;;  %v1523_v18 = vmax.f32 %v1521_v63, %v1522_v11 }
 0x1b5   : > { %v1517_v61 = vrot.slane %v1516_v10, 2  ;;  %v1529_v52 = vrot.slane %v1528_v13, 4  ;;  %v1293_v20 = vrot.slane %v1292_v15, 2  ;;  %v1306_v25 = vmax.f32 %v1304_v9, %v1305_v57 }
 0x1b6   : > { %v1287_v19 = vmax.f32 %v1285_v41, %v1286_v14  ;;  %v1300_v22 = vrot.slane %v1299_v16, 2  ;;  %v1511_v26 = vmax.f32 %v1509_v8, %v1510_v17  ;;  %v1524_v28 = vrot.slane %v1523_v18, 2 }
 0x1b7   : > { %v1518_v21 = vmax.f32 %v1516_v10, %v1517_v61  ;;  %v1530_v29 = vmax.f32 %v1528_v13, %v1529_v52  ;;  %v1294_v30 = vmax.f32 %v1292_v15, %v1293_v20  ;;  %v1307_v33 = vrot.slane %v1306_v25, 2 }
 0x1b8   : > { %v1288_v12 = vrot.slane %v1287_v19, 1  ;;  %v1301_v32 = vmax.f32 %v1299_v16, %v1300_v22  ;;  %v1512_v34 = vrot.slane %v1511_v26, 1  ;;  %v1525_v23 = vmax.f32 %v1523_v18, %v1524_v28 }
 0x1b9   : > { %v1519_v31 = vrot.slane %v1518_v21, 1  ;;  %v1531_v35 = vrot.slane %v1530_v29, 2  ;;  %v1295_v40 = vrot.slane %v1294_v30, 1  ;;  %v1308_v2 = vmax.f32 %v1306_v25, %v1307_v33 }
 0x1ba   : > { %v1289_v37 = vmax.f32 %v1287_v19, %v1288_v12  ;;  %v1302_v42 = vrot.slane %v1301_v32, 1  ;;  %v1513_v47 = vmax.f32 %v1511_v26, %v1512_v34  ;;  %v1526_v50 = vrot.slane %v1525_v23, 1 }
 0x1bb   : > { %v1520_v49 = vmax.f32 %v1518_v21, %v1519_v31  ;;  %v1532_v51 = vmax.f32 %v1530_v29, %v1531_v35  ;;  %v1296_v39 = vmax.f32 %v1294_v30, %v1295_v40  ;;  %v1309_v56 = vrot.slane %v1308_v2, 1 }
 0x1bc   : > { %v1303_v46 = vmax.f32 %v1301_v32, %v1302_v42  ;;  %v2893_v58 = vsel %vm1675_vm14, %v1289_v37, -inf  ;;  %v1527_v59 = vmax.f32 %v1525_v23, %v1526_v50  ;;  %v2896_v60 = vsel %vm1675_vm14, %v1513_v47, -inf }
 0x1bd   : > { %v1533_v38 = vrot.slane %v1532_v51, 1  ;;  %v2899_v62 = vsel %vm1675_vm14, %v1520_v49, -inf  ;;  %v1310_v63 = vmax.f32 %v1308_v2, %v1309_v56  ;;  %v2902_v0 = vsel %vm1675_vm14, %v1296_v39, -inf }
 0x1be   : > { %v2905_v3 = vsel %vm1675_vm14, %v1303_v46, -inf  ;;  %v904_v5 = vrot.slane %v890_v53, %v2849_v24  ;;  %v2912_v41 = vsel %vm1675_vm14, %v1527_v59, -inf  ;;  %v905_v7 = vcombine.high %v2879_v54, %v2879_v54 }
 0x1bf   : > { %v1534_v6 = vmax.f32 %v1532_v51, %v1533_v38  ;;  %v1227_v1 = vsel %vm1226_vm13, %v2879_v54, -inf  ;;  %v2919_v8 = vsel %vm1675_vm14, %v1310_v63, -inf  ;;  %v1041_v14 = vcombine.high %v2868_v27, %v2868_v27 }
 0x1c0   : > { %v906_v9 = vcombine.high %v904_v5, %v904_v5  ;;  %v1228_v10 = vrot.slane %v1227_v1, 4  ;;  %v1241_v11 = vsel %vm1226_vm13, %v904_v5, -inf  ;;  %v1234_v53 = vsel %vm1226_vm13, %v905_v7, -inf }
 0x1c1   : > { %v2923_v45 = vsel %vm1675_vm14, %v1534_v6, -inf  ;;  %v1242_v13 = vrot.slane %v1241_v11, 4  ;;  %v1235_v16 = vrot.slane %v1234_v53, 4  ;;  %v1042_v57 = vcombine.high %v2882_v55, %v2882_v55 }
 0x1c2   : > { %v1229_v15 = vmax.f32 %v1227_v1, %v1228_v10  ;;  %v1248_v54 = vsel %vm1226_vm13, %v906_v9, -inf  ;;  %v1451_v18 = vsel %vm1226_vm13, %v2868_v27, -inf  ;;  %v1458_v52 = vsel %vm1226_vm13, %v1041_v14, -inf }
 0x1c3   : > { %v1243_v17 = vmax.f32 %v1241_v11, %v1242_v13  ;;  %v1249_v61 = vrot.slane %v1248_v54, 4  ;;  %v1236_v20 = vmax.f32 %v1234_v53, %v1235_v16  ;;  %v1452_v22 = vrot.slane %v1451_v18, 4 }
 0x1c4   : > { %v1230_v19 = vrot.slane %v1229_v15, 2  ;;  %v1459_v25 = vrot.slane %v1458_v52, 4  ;;  %v1465_v28 = vsel %vm1226_vm13, %v2882_v55, -inf  ;;  %v1472_v29 = vsel %vm1226_vm13, %v1042_v57, -inf }
 0x1c5   : > { %v1244_v26 = vrot.slane %v1243_v17, 2  ;;  %v1250_v21 = vmax.f32 %v1248_v54, %v1249_v61  ;;  %v1237_v30 = vrot.slane %v1236_v20, 2  ;;  %v1453_v32 = vmax.f32 %v1451_v18, %v1452_v22 }
 0x1c6   : > { %v1231_v12 = vmax.f32 %v1229_v15, %v1230_v19  ;;  %v1460_v33 = vmax.f32 %v1458_v52, %v1459_v25  ;;  %v1466_v27 = vrot.slane %v1465_v28, 4  ;;  %v1473_v23 = vrot.slane %v1472_v29, 4 }
 0x1c7   : > { %v1245_v34 = vmax.f32 %v1243_v17, %v1244_v26  ;;  %v1251_v31 = vrot.slane %v1250_v21, 2  ;;  %v1238_v37 = vmax.f32 %v1236_v20, %v1237_v30  ;;  %v1454_v40 = vrot.slane %v1453_v32, 2 }
 0x1c8   : > { %v1232_v35 = vrot.slane %v1231_v12, 1  ;;  %v1461_v42 = vrot.slane %v1460_v33, 2  ;;  %v1467_v49 = vmax.f32 %v1465_v28, %v1466_v27  ;;  %v1474_v50 = vmax.f32 %v1472_v29, %v1473_v23 }
 0x1c9   : > { %v1246_v2 = vrot.slane %v1245_v34, 1  ;;  %v1252_v47 = vmax.f32 %v1250_v21, %v1251_v31  ;;  %v1239_v55 = vrot.slane %v1238_v37, 1  ;;  %v1455_v39 = vmax.f32 %v1453_v32, %v1454_v40 }
 0x1ca   : > { %v1233_v51 = vmax.f32 %v1231_v12, %v1232_v35  ;;  %v1462_v46 = vmax.f32 %v1460_v33, %v1461_v42  ;;  %v1468_v38 = vrot.slane %v1467_v49, 2  ;;  %v1475_v63 = vrot.slane %v1474_v50, 2 }
 0x1cb   : > { %v1247_v56 = vmax.f32 %v1245_v34, %v1246_v2  ;;  %v1253_v59 = vrot.slane %v1252_v47, 1  ;;  %v1240_v5 = vmax.f32 %v1238_v37, %v1239_v55  ;;  %v1456_v7 = vrot.slane %v1455_v39, 1 }
 0x1cc   : > { %v1676_v6 = vsel %vm1675_vm14, %v1233_v51, -inf  ;;  %v1463_v1 = vrot.slane %v1462_v46, 1  ;;  %v1469_v53 = vmax.f32 %v1467_v49, %v1468_v38  ;;  %v1476_v19 = vmax.f32 %v1474_v50, %v1475_v63 }
 0x1cd   : > { %v1254_v9 = vmax.f32 %v1252_v47, %v1253_v59  ;;  %v1678_v10 = vmax.f32 %v1676_v6, %v2893_v58  ;;  %v1682_v11 = vsel %vm1675_vm14, %v1247_v56, -inf  ;;  %v1679_v13 = vsel %vm1675_vm14, %v1240_v5, -inf }
 0x1ce   : > { %v1684_v14 = vmax.f32 %v1682_v11, %v2905_v3  ;;  %v1457_v15 = vmax.f32 %v1455_v39, %v1456_v7  ;;  %v1464_v16 = vmax.f32 %v1462_v46, %v1463_v1  ;;  %v1681_v54 = vmax.f32 %v1679_v13, %v2902_v0 }
 0x1cf   : > { %v1685_v57 = vsel %vm1675_vm14, %v1254_v9, -inf  ;;  %v2154_v17 = vpack.c.bf16 %v1678_v10, %v1678_v10  ;;  %v1470_v61 = vrot.slane %v1469_v53, 1  ;;  %v1477_v28 = vrot.slane %v1476_v19, 1 }
 0x1d0   : > { %v1687_v18 = vmax.f32 %v1685_v57, %v2919_v8  ;;  %v2156_v52 = vpack.c.bf16 %v1684_v14, %v1684_v14  ;;  %v1724_v58 = vsel %vm1675_vm14, %v1457_v15, -inf  ;;  %v2155_v20 = vpack.c.bf16 %v1681_v54, %v1681_v54 }
 0x1d1   : > { %v1900_v22 = vunpack.c.l.b16 %v2154_v17  ;;  %v1471_v25 = vmax.f32 %v1469_v53, %v1470_v61  ;;  %v1726_v26 = vmax.f32 %v1724_v58, %v2896_v60  ;;  %v1727_v0 = vsel %vm1675_vm14, %v1464_v16, -inf }
 0x1d2   : > { %v2157_v3 = vpack.c.bf16 %v1687_v18, %v1687_v18  ;;  %v1902_v21 = vunpack.c.l.b16 %v2156_v52  ;;  %v1901_v29 = vunpack.c.l.b16 %v2155_v20  ;;  %v1729_v12 = vmax.f32 %v1727_v0, %v2899_v62 }
 0x1d3   : > { %v1730_v30 = vsel %vm1675_vm14, %v1471_v25, -inf  ;;  %v2170_v8 = vpack.c.bf16 %v1726_v26, %v1726_v26  ;;  %v1478_v33 = vmax.f32 %v1476_v19, %v1477_v28  ;;  %v861_v31 = vmax.f32 %v2861_v43, 0.0 }
 0x1d4   : > { %v2950_v32 = vunpack.c.l.b16 %v2157_v3  ;;  %v1732_v34 = vmax.f32 %v1730_v30, %v2912_v41  ;;  %v1933_v60 = vsel %vm1932_vm15, %v1901_v29, %v1900_v22  ;;  %v2171_v27 = vpack.c.bf16 %v1729_v12, %v1729_v12 }
 0x1d5   : > { %v1916_v23 = vunpack.c.l.b16 %v2170_v8  ;;  %v1077_v35 = vcombine.high %v2870_v4, %v2870_v4  ;;  %v2958_v37 = vsel %vm1934_vm0, %v1902_v21, %v1933_v60  ;;  %v1733_v62 = vsel %vm1675_vm14, %v1478_v33, -inf }
 0x1d6   : > { %v2172_v40 = vpack.c.bf16 %v1732_v34, %v1732_v34  ;;  %v941_v42 = vcombine.high %v861_v31, %v861_v31  ;;  %v1735_v2 = vmax.f32 %v1733_v62, %v2923_v45  ;;  %v1917_v47 = vunpack.c.l.b16 %v2171_v27 }
 0x1d7   : > { %v948_v41 = vrot.slane %v861_v31, %v2849_v24  ;;  %v1084_v43 = vrot.slane %v2870_v4, %v2849_v24  ;;  %v1091_v51 = vrot.slane %v1077_v35, %v2849_v24  ;;  %v2969_v55 = vadd.f32 %v2847_v48, %v2863_v44 }
 0x1d8   : > { %v1918_v49 = vunpack.c.l.b16 %v2172_v40  ;;  %v955_v50 = vrot.slane %v941_v42, %v2849_v24  ;;  %v2173_v39 = vpack.c.bf16 %v1735_v2, %v1735_v2  ;;  %v1953_v46 = vsel %vm1932_vm15, %v1917_v47, %v1916_v23 }
 0x1d9   : > { %v956_v56 = vcombine.high %v948_v41, %v948_v41  ;;  %v1311_v45 = vsel %vm1226_vm13, %v948_v41, -inf  ;;  %v1092_v44 = vcombine.high %v1084_v43, %v1084_v43  ;;  %v1093_v11 = vcombine.high %v1091_v51, %v1091_v51 }
 0x1da   : > { %v2974_v59 = vsel %vm1934_vm0, %v1918_v49, %v1953_v46  ;;  %v957_v38 = vcombine.high %v955_v50, %v955_v50  ;;  %v1312_v4 = vrot.slane %v1311_v45, 4  ;;  %v1325_v63 = vsel %vm1226_vm13, %v955_v50, -inf }
 0x1db   : > { %v2977_v5 = vunpack.c.l.b16 %v2173_v39  ;;  %v1318_v6 = vsel %vm1226_vm13, %v956_v56, -inf  ;;  %v1326_v7 = vrot.slane %v1325_v63, 4  ;;  %v1535_v14 = vsel %vm1226_vm13, %v1084_v43, -inf }
 0x1dc   : > { %v1313_v1 = vmax.f32 %v1311_v45, %v1312_v4  ;;  %v1319_v9 = vrot.slane %v1318_v6, 4  ;;  %v1332_v10 = vsel %vm1226_vm13, %v957_v38, -inf  ;;  %v1542_v15 = vsel %vm1226_vm13, %v1092_v44, -inf }
 0x1dd   : > { %v1327_v53 = vmax.f32 %v1325_v63, %v1326_v7  ;;  %v1333_v13 = vrot.slane %v1332_v10, 4  ;;  %v1536_v57 = vrot.slane %v1535_v14, 4  ;;  %v1543_v17 = vrot.slane %v1542_v15, 4 }
 0x1de   : > { %v1314_v16 = vrot.slane %v1313_v1, 2  ;;  %v1320_v54 = vmax.f32 %v1318_v6, %v1319_v9  ;;  %v1549_v52 = vsel %vm1226_vm13, %v1091_v51, -inf  ;;  %v1556_v19 = vsel %vm1226_vm13, %v1093_v11, -inf }
 0x1df   : > { %v1328_v61 = vrot.slane %v1327_v53, 2  ;;  %v1334_v18 = vmax.f32 %v1332_v10, %v1333_v13  ;;  %v1537_v22 = vmax.f32 %v1535_v14, %v1536_v57  ;;  %v1544_v25 = vmax.f32 %v1542_v15, %v1543_v17 }
 0x1e0   : > { %v1315_v58 = vmax.f32 %v1313_v1, %v1314_v16  ;;  %v1321_v20 = vrot.slane %v1320_v54, 2  ;;  %v1550_v21 = vrot.slane %v1549_v52, 4  ;;  %v1557_v28 = vrot.slane %v1556_v19, 4 }
 0x1e1   : > { %v1329_v26 = vmax.f32 %v1327_v53, %v1328_v61  ;;  %v1335_v3 = vrot.slane %v1334_v18, 2  ;;  %v1538_v12 = vrot.slane %v1537_v22, 2  ;;  %v1545_v30 = vrot.slane %v1544_v25, 2 }
 0x1e2   : > { %v1316_v0 = vrot.slane %v1315_v58, 1  ;;  %v1322_v29 = vmax.f32 %v1320_v54, %v1321_v20  ;;  %v2985_v8 = vpop.f32.mrb[4].mxu1  ;;  %v1551_v31 = vmax.f32 %v1549_v52, %v1550_v21  ;;  %v1558_v60 = vmax.f32 %v1556_v19, %v1557_v28 }
 0x1e3   : > { %v1330_v33 = vrot.slane %v1329_v26, 1  ;;  %v1336_v34 = vmax.f32 %v1334_v18, %v1335_v3  ;;  %v2987_v27 = vpop.f32.mrb[5].mxu1  ;;  %v1539_v62 = vmax.f32 %v1537_v22, %v1538_v12  ;;  %v1546_v40 = vmax.f32 %v1544_v25, %v1545_v30  ;;  %v2206_v42 = vpop.f32.mrb[4].mxu0 }
 0x1e4   : > { %v1317_v23 = vmax.f32 %v1315_v58, %v1316_v0  ;;  %v1323_v35 = vrot.slane %v1322_v29, 1  ;;  %v2989_v2 = vpop.f32.mrb[6].mxu1  ;;  %v1552_v43 = vrot.slane %v1551_v31, 2  ;;  %v1559_v49 = vrot.slane %v1558_v60, 2  ;;  %v2991_v50 = vpop.f32.mrb[5].mxu0 }
 0x1e5   : > { %v1331_v47 = vmax.f32 %v1329_v26, %v1330_v33  ;;  %v1337_v41 = vrot.slane %v1336_v34, 1  ;;  %v2993_v51 = vpop.f32.mrb[7].mxu1  ;;  %v1540_v56 = vrot.slane %v1539_v62, 1  ;;  %v1547_v45 = vrot.slane %v1546_v40, 1  ;;  %v2998_v38 = vpop.f32.mrb[6].mxu0 }
 0x1e6   : > { %v1324_v39 = vmax.f32 %v1322_v29, %v1323_v35  ;;  %v2996_v46 = vsel %vm1675_vm14, %v1317_v23, -inf  ;;  %v1553_v6 = vmax.f32 %v1551_v31, %v1552_v43  ;;  %v1560_v7 = vmax.f32 %v1558_v60, %v1559_v49  ;;  %v3003_v44 = vpop.f32.mrb[7].mxu0 }
 0x1e7   : > { %v1338_v4 = vmax.f32 %v1336_v34, %v1337_v41  ;;  %v3001_v63 = vsel %vm1675_vm14, %v1331_v47, -inf  ;;  %v1541_v9 = vmax.f32 %v1539_v62, %v1540_v56  ;;  %v1548_v10 = vmax.f32 %v1546_v40, %v1547_v45 }
 0x1e8   : > { %v3006_v1 = vsel %vm1675_vm14, %v1324_v39, -inf  ;;  %v859_v11 = vmax.f32 %v2969_v55, 0.0  ;;  %v1554_v13 = vrot.slane %v1553_v6, 1  ;;  %v1561_v14 = vrot.slane %v1560_v7, 1 }
 0x1e9   : > { %v3010_v53 = vsel %vm1675_vm14, %v1338_v4, -inf  ;;  %v3015_v15 = vsel %vm1936_vm1, %v2950_v32, %v2958_v37  ;;  %v3018_v16 = vsel %vm1675_vm14, %v1541_v9, -inf  ;;  %v3021_v54 = vsel %vm1675_vm14, %v1548_v10, -inf }
 0x1ea   : > { %v907_v57 = vcombine.high %v859_v11, %v859_v11  ;;  %v914_v17 = vrot.slane %v859_v11, %v2849_v24  ;;  %v1555_v55 = vmax.f32 %v1553_v6, %v1554_v13  ;;  %v1562_v61 = vmax.f32 %v1560_v7, %v1561_v14 }
 0x1eb   : > { %v867_v18 = vmax.f32 %v2857_v36, 0.0  ;;  %v3028_v52 = vsel %vm1936_vm1, %v2977_v5, %v2974_v59  ;;  %v820_v58 = vadd.f32 %v2206_v42, %v2847_v48 }
 0x1ec   : > { %v921_v32 = vrot.slane %v907_v57, %v2849_v24  ;;  %v922_v37 = vcombine.high %v914_v17, %v914_v17  ;;  %v1255_v19 = vsel %vm1226_vm13, %v914_v17, -inf  ;;  %v3034_v20 = vsel %vm1675_vm14, %v1555_v55, -inf }
 0x1ed   : > { %v3037_v22 = vsel %vm1675_vm14, %v1562_v61, -inf  ;;  %v1256_v25 = vrot.slane %v1255_v19, 4  ;;  %v1043_v36 = vcombine.high %v867_v18, %v867_v18  ;;  %v1050_v5 = vrot.slane %v867_v18, %v2849_v24 }
 0x1ee   : > { %v923_v26 = vcombine.high %v921_v32, %v921_v32  ;;  %v1262_v3 = vsel %vm1226_vm13, %v922_v37, -inf  ;;  %v1269_v59 = vsel %vm1226_vm13, %v921_v32, -inf  ;;  %v3045_v34 = vmax.f32 %v820_v58, 0.0 }
 0x1ef   : > { %v1257_v21 = vmax.f32 %v1255_v19, %v1256_v25  ;;  %v1263_v28 = vrot.slane %v1262_v3, 4  ;;  %v1270_v0 = vrot.slane %v1269_v59, 4  ;;  %v1057_v29 = vrot.slane %v1043_v36, %v2849_v24 }
 0x1f0   : > { %v1276_v12 = vsel %vm1226_vm13, %v923_v26, -inf  ;;  %v1058_v30 = vcombine.high %v1050_v5, %v1050_v5  ;;  %v1479_v33 = vsel %vm1226_vm13, %v1050_v5, -inf }
 0x1f1   : > { %v1258_v31 = vrot.slane %v1257_v21, 2  ;;  %v1264_v60 = vmax.f32 %v1262_v3, %v1263_v28  ;;  %v1271_v23 = vmax.f32 %v1269_v59, %v1270_v0  ;;  %v1277_v35 = vrot.slane %v1276_v12, 4 }
 0x1f2   : > { %v1059_v62 = vcombine.high %v1057_v29, %v1057_v29  ;;  %v1480_v40 = vrot.slane %v1479_v33, 4  ;;  %v1486_v42 = vsel %vm1226_vm13, %v1058_v30, -inf  ;;  %v1493_v47 = vsel %vm1226_vm13, %v1057_v29, -inf }
 0x1f3   : > { %v1259_v41 = vmax.f32 %v1257_v21, %v1258_v31  ;;  %v1265_v43 = vrot.slane %v1264_v60, 2  ;;  %v1272_v49 = vrot.slane %v1271_v23, 2  ;;  %v1278_v39 = vmax.f32 %v1276_v12, %v1277_v35 }
 0x1f4   : > { %v1481_v56 = vmax.f32 %v1479_v33, %v1480_v40  ;;  %v1487_v45 = vrot.slane %v1486_v42, 4  ;;  %v1494_v4 = vrot.slane %v1493_v47, 4  ;;  %v1500_v6 = vsel %vm1226_vm13, %v1059_v62, -inf }
 0x1f5   : > { %v1260_v7 = vrot.slane %v1259_v41, 1  ;;  %v1266_v9 = vmax.f32 %v1264_v60, %v1265_v43  ;;  %v1273_v10 = vmax.f32 %v1271_v23, %v1272_v49  ;;  %v1279_v11 = vrot.slane %v1278_v39, 2 }
 0x1f6   : > { %v1482_v13 = vrot.slane %v1481_v56, 2  ;;  %v1488_v14 = vmax.f32 %v1486_v42, %v1487_v45  ;;  %v1495_v57 = vmax.f32 %v1493_v47, %v1494_v4  ;;  %v1501_v17 = vrot.slane %v1500_v6, 4 }
 0x1f7   : > { %v1261_v55 = vmax.f32 %v1259_v41, %v1260_v7  ;;  %v1267_v61 = vrot.slane %v1266_v9, 1  ;;  %v1274_v18 = vrot.slane %v1273_v10, 1  ;;  %v1280_v32 = vmax.f32 %v1278_v39, %v1279_v11 }
 0x1f8   : > { %v1483_v37 = vmax.f32 %v1481_v56, %v1482_v13  ;;  %v1489_v19 = vrot.slane %v1488_v14, 2  ;;  %v1496_v58 = vrot.slane %v1495_v57, 2  ;;  %v1502_v25 = vmax.f32 %v1500_v6, %v1501_v17 }
 0x1f9   : > { %v1268_v36 = vmax.f32 %v1266_v9, %v1267_v61  ;;  %v1275_v26 = vmax.f32 %v1273_v10, %v1274_v18  ;;  %v1281_v3 = vrot.slane %v1280_v32, 1  ;;  %v1688_v59 = vsel %vm1675_vm14, %v1261_v55, -inf }
 0x1fa   : > { %v1690_v5 = vmax.f32 %v1688_v59, %v2996_v46  ;;  %v1484_v21 = vrot.slane %v1483_v37, 1  ;;  %v1490_v28 = vmax.f32 %v1488_v14, %v1489_v19  ;;  %v1497_v0 = vmax.f32 %v1495_v57, %v1496_v58 }
 0x1fb   : > { %v1282_v29 = vmax.f32 %v1280_v32, %v1281_v3  ;;  %v1691_v12 = vsel %vm1675_vm14, %v1268_v36, -inf  ;;  %v1694_v30 = vsel %vm1675_vm14, %v1275_v26, -inf  ;;  %v1503_v33 = vrot.slane %v1502_v25, 2 }
 0x1fc   : > { %v1693_v31 = vmax.f32 %v1691_v12, %v3006_v1  ;;  %v1696_v60 = vmax.f32 %v1694_v30, %v3001_v63  ;;  %v2158_v23 = vpack.c.bf16 %v1690_v5, %v1690_v5  ;;  %v1485_v35 = vmax.f32 %v1483_v37, %v1484_v21 }
 0x1fd   : > { %v1697_v62 = vsel %vm1675_vm14, %v1282_v29, -inf  ;;  %v1491_v40 = vrot.slane %v1490_v28, 1  ;;  %v1498_v42 = vrot.slane %v1497_v0, 1  ;;  %v1504_v46 = vmax.f32 %v1502_v25, %v1503_v33 }
 0x1fe   : > { %v1699_v47 = vmax.f32 %v1697_v62, %v3010_v53  ;;  %v2159_v41 = vpack.c.bf16 %v1693_v31, %v1693_v31  ;;  %v2160_v43 = vpack.c.bf16 %v1696_v60, %v1696_v60  ;;  %v1904_v49 = vunpack.c.l.b16 %v2158_v23 }
 0x1ff   : > { %v1492_v39 = vmax.f32 %v1490_v28, %v1491_v40  ;;  %v1499_v56 = vmax.f32 %v1497_v0, %v1498_v42  ;;  %v1505_v45 = vrot.slane %v1504_v46, 1  ;;  %v1736_v4 = vsel %vm1675_vm14, %v1485_v35, -inf }
 0x200   : > { %v2161_v1 = vpack.c.bf16 %v1699_v47, %v1699_v47  ;;  %v1905_v6 = vunpack.c.l.b16 %v2159_v41  ;;  %v1906_v63 = vunpack.c.l.b16 %v2160_v43  ;;  %v1939_v7 = vsel %vm1938_vm2, %v1904_v49, %v3015_v15 }
 0x201   : > { %v1506_v9 = vmax.f32 %v1504_v46, %v1505_v45  ;;  %v1738_v10 = vmax.f32 %v1736_v4, %v3018_v16  ;;  %v1739_v11 = vsel %vm1675_vm14, %v1492_v39, -inf  ;;  %v1742_v53 = vsel %vm1675_vm14, %v1499_v56, -inf }
 0x202   : > { %v1907_v13 = vunpack.c.l.b16 %v2161_v1  ;;  %v1941_v14 = vsel %vm1940_vm3, %v1905_v6, %v1939_v7  ;;  %v1741_v57 = vmax.f32 %v1739_v11, %v3021_v54  ;;  %v1744_v17 = vmax.f32 %v1742_v53, %v3034_v20 }
 0x203   : > { %v1943_v55 = vsel %vm1942_vm4, %v1906_v63, %v1941_v14  ;;  %v1745_v61 = vsel %vm1675_vm14, %v1506_v9, -inf  ;;  %v2174_v18 = vpack.c.bf16 %v1738_v10, %v1738_v10  ;;  %v992_v15 = vcombine.high %v3045_v34, %v3045_v34 }
 0x204   : > { %v3072_v16 = vsel %vm1944_vm5, %v1907_v13, %v1943_v55  ;;  %v1747_v32 = vmax.f32 %v1745_v61, %v3037_v22  ;;  %v2175_v37 = vpack.c.bf16 %v1741_v57, %v1741_v57  ;;  %v2176_v19 = vpack.c.bf16 %v1744_v17, %v1744_v17 }
 0x205   : > { %v1920_v58 = vunpack.c.l.b16 %v2174_v18  ;;  %v999_v54 = vrot.slane %v3045_v34, %v2849_v24  ;;  %v1006_v20 = vrot.slane %v992_v15, %v2849_v24  ;;  %v852_v3 = vadd.f32 %v2985_v8, %v2847_v48 }
 0x206   : > { %v2177_v25 = vpack.c.bf16 %v1747_v32, %v1747_v32  ;;  %v1921_v36 = vunpack.c.l.b16 %v2175_v37  ;;  %v1922_v26 = vunpack.c.l.b16 %v2176_v19  ;;  %v812_v40 = vadd.f32 %v2847_v48, %v2991_v50 }
 0x207   : > { %v1956_v59 = vsel %vm1938_vm2, %v1920_v58, %v3028_v52  ;;  %v1007_v5 = vcombine.high %v999_v54, %v999_v54  ;;  %v1008_v21 = vcombine.high %v1006_v20, %v1006_v20  ;;  %v1395_v22 = vsel %vm1226_vm13, %v999_v54, -inf }
 0x208   : > { %v1923_v28 = vunpack.c.l.b16 %v2177_v25  ;;  %v1957_v0 = vsel %vm1940_vm3, %v1921_v36, %v1956_v59  ;;  %v1396_v29 = vrot.slane %v1395_v22, 4  ;;  %v1409_v34 = vsel %vm1226_vm13, %v1006_v20, -inf }
 0x209   : > { %v1958_v12 = vsel %vm1942_vm4, %v1922_v26, %v1957_v0  ;;  %v1402_v30 = vsel %vm1226_vm13, %v1007_v5, -inf  ;;  %v1410_v33 = vrot.slane %v1409_v34, 4  ;;  %v1416_v8 = vsel %vm1226_vm13, %v1008_v21, -inf }
 0x20a   : > { %v3089_v31 = vsel %vm1944_vm5, %v1923_v28, %v1958_v12  ;;  %v1397_v52 = vmax.f32 %v1395_v22, %v1396_v29  ;;  %v1403_v60 = vrot.slane %v1402_v30, 4  ;;  %v1417_v23 = vrot.slane %v1416_v8, 4 }
 0x20b   : > { %v1411_v35 = vmax.f32 %v1409_v34, %v1410_v33  ;;  %v872_v62 = vmax.f32 %v852_v3, 0.0  ;;  %v1967_v42 = vpack.c.b16 %v3072_v16, %v3072_v16  ;;  %v844_v56 = vadd.f32 %v2847_v48, %v2987_v27 }
 0x20c   : > { %v1398_v46 = vrot.slane %v1397_v52, 2  ;;  %v1404_v47 = vmax.f32 %v1402_v30, %v1403_v60  ;;  %v1418_v41 = vmax.f32 %v1416_v8, %v1417_v23  ;;  %v862_v6 = vmax.f32 %v812_v40, 0.0 }
 0x20d   : > { %v1412_v43 = vrot.slane %v1411_v35, 2  ;;  %v1128_v49 = vcombine.high %v872_v62, %v872_v62  ;;  %v1135_v39 = vrot.slane %v872_v62, %v2849_v24  ;;  %v1969_v58 = vpack.c.b16 %v3089_v31, %v3089_v31  ;;  %1976 = vst.msk [vmem:[%s3233_s27] sm:$0xf] %vm1975_vm6, %v1967_v42 }
 0x20e   : > { %v1399_v45 = vmax.f32 %v1397_v52, %v1398_v46  ;;  %v1405_v4 = vrot.slane %v1404_v47, 2  ;;  %v1419_v1 = vrot.slane %v1418_v41, 2  ;;  %v870_v25 = vmax.f32 %v844_v56, 0.0 }
 0x20f   : > { %v1413_v63 = vmax.f32 %v1411_v35, %v1412_v43  ;;  %v1142_v50 = vrot.slane %v1128_v49, %v2849_v24  ;;  %v1143_v7 = vcombine.high %v1135_v39, %v1135_v39  ;;  %v1619_v9 = vsel %vm1226_vm13, %v1135_v39, -inf  ;;  %1978 = vst.msk [vmem:[%s3233_s27 + $0x8] sm:$0xf] %vm1975_vm6, %v1969_v58 }
 0x210   : > { %v1400_v10 = vrot.slane %v1399_v45, 1  ;;  %v1406_v11 = vmax.f32 %v1404_v47, %v1405_v4  ;;  %v1420_v53 = vmax.f32 %v1418_v41, %v1419_v1  ;;  %v1620_v13 = vrot.slane %v1619_v9, 4 }
 0x211   : > { %v1414_v14 = vrot.slane %v1413_v63, 1  ;;  %v1144_v57 = vcombine.high %v1142_v50, %v1142_v50  ;;  %v1626_v17 = vsel %vm1226_vm13, %v1143_v7, -inf  ;;  %v1633_v48 = vsel %vm1226_vm13, %v1142_v50, -inf }
 0x212   : > { %v1401_v27 = vmax.f32 %v1399_v45, %v1400_v10  ;;  %v1407_v55 = vrot.slane %v1406_v11, 1  ;;  %v1421_v61 = vrot.slane %v1420_v53, 1  ;;  %v1621_v18 = vmax.f32 %v1619_v9, %v1620_v13 }
 0x213   : > { %v1415_v15 = vmax.f32 %v1413_v63, %v1414_v14  ;;  %v1627_v32 = vrot.slane %v1626_v17, 4  ;;  %v1634_v37 = vrot.slane %v1633_v48, 4  ;;  %v1640_v19 = vsel %vm1226_vm13, %v1144_v57, -inf }
 0x214   : > { %v1408_v54 = vmax.f32 %v1406_v11, %v1407_v55  ;;  %v1622_v20 = vrot.slane %v1621_v18, 2  ;;  %v1422_v36 = vmax.f32 %v1420_v53, %v1421_v61  ;;  %v1641_v59 = vrot.slane %v1640_v19, 4 }
 0x215   : > { %v1628_v26 = vmax.f32 %v1626_v17, %v1627_v32  ;;  %v1635_v3 = vmax.f32 %v1633_v48, %v1634_v37  ;;  %v3106_v5 = vsel %vm1675_vm14, %v1401_v27, -inf  ;;  %v3109_v21 = vsel %vm1675_vm14, %v1415_v15, -inf }
 0x216   : > { %v1623_v22 = vmax.f32 %v1621_v18, %v1622_v20  ;;  %v958_v28 = vcombine.high %v862_v6, %v862_v6  ;;  %v1642_v34 = vmax.f32 %v1640_v19, %v1641_v59  ;;  %v965_v12 = vrot.slane %v862_v6, %v2849_v24 }
 0x217   : > { %v1629_v0 = vrot.slane %v1628_v26, 2  ;;  %v1636_v29 = vrot.slane %v1635_v3, 2  ;;  %v3113_v30 = vsel %vm1675_vm14, %v1408_v54, -inf  ;;  %v1094_v52 = vcombine.high %v870_v25, %v870_v25 }
 0x218   : > { %v1624_v33 = vrot.slane %v1623_v22, 1  ;;  %v972_v8 = vrot.slane %v958_v28, %v2849_v24  ;;  %v1643_v35 = vrot.slane %v1642_v34, 2  ;;  %v973_v62 = vcombine.high %v965_v12, %v965_v12 }
 0x219   : > { %v1630_v60 = vmax.f32 %v1628_v26, %v1629_v0  ;;  %v1637_v23 = vmax.f32 %v1635_v3, %v1636_v29  ;;  %v1339_v47 = vsel %vm1226_vm13, %v965_v12, -inf  ;;  %v1101_v6 = vrot.slane %v870_v25, %v2849_v24 }
 0x21a   : > { %v1625_v40 = vmax.f32 %v1623_v22, %v1624_v33  ;;  %v974_v46 = vcombine.high %v972_v8, %v972_v8  ;;  %v1353_v41 = vsel %vm1226_vm13, %v972_v8, -inf  ;;  %v1644_v39 = vmax.f32 %v1642_v34, %v1643_v35 }
 0x21b   : > { %v1631_v43 = vrot.slane %v1630_v60, 1  ;;  %v1638_v49 = vrot.slane %v1637_v23, 1  ;;  %v1340_v56 = vrot.slane %v1339_v47, 4  ;;  %v1346_v45 = vsel %vm1226_vm13, %v973_v62, -inf }
 0x21c   : > { %v1354_v4 = vrot.slane %v1353_v41, 4  ;;  %v1360_v1 = vsel %vm1226_vm13, %v974_v46, -inf  ;;  %v1710_v63 = vsel %vm1675_vm14, %v1422_v36, -inf  ;;  %v1645_v7 = vrot.slane %v1644_v39, 1 }
 0x21d   : > { %v1632_v50 = vmax.f32 %v1630_v60, %v1631_v43  ;;  %v1341_v9 = vmax.f32 %v1339_v47, %v1340_v56  ;;  %v1347_v10 = vrot.slane %v1346_v45, 4  ;;  %v1361_v53 = vrot.slane %v1360_v1, 4 }
 0x21e   : > { %v1355_v11 = vmax.f32 %v1353_v41, %v1354_v4  ;;  %v1108_v13 = vrot.slane %v1094_v52, %v2849_v24  ;;  %v1639_v14 = vmax.f32 %v1637_v23, %v1638_v49  ;;  %v1646_v57 = vmax.f32 %v1644_v39, %v1645_v7 }
 0x21f   : > { %v3124_v17 = vsel %vm1675_vm14, %v1625_v40, -inf  ;;  %v1342_v48 = vrot.slane %v1341_v9, 2  ;;  %v1348_v27 = vmax.f32 %v1346_v45, %v1347_v10  ;;  %v1362_v61 = vmax.f32 %v1360_v1, %v1361_v53 }
 0x220   : > { %v1356_v55 = vrot.slane %v1355_v11, 2  ;;  %v1109_v18 = vcombine.high %v1101_v6, %v1101_v6  ;;  %v3127_v15 = vsel %vm1675_vm14, %v1632_v50, -inf  ;;  %v1110_v37 = vcombine.high %v1108_v13, %v1108_v13 }
 0x221   : > { %v1343_v32 = vmax.f32 %v1341_v9, %v1342_v48  ;;  %v1563_v19 = vsel %vm1226_vm13, %v1101_v6, -inf  ;;  %v1349_v54 = vrot.slane %v1348_v27, 2  ;;  %v1363_v25 = vrot.slane %v1362_v61, 2 }
 0x222   : > { %v1357_v20 = vmax.f32 %v1355_v11, %v1356_v55  ;;  %v1564_v36 = vrot.slane %v1563_v19, 4  ;;  %v1570_v3 = vsel %vm1226_vm13, %v1109_v18, -inf  ;;  %v1577_v59 = vsel %vm1226_vm13, %v1108_v13, -inf }
 0x223   : > { %v1344_v26 = vrot.slane %v1343_v32, 1  ;;  %v1584_v22 = vsel %vm1226_vm13, %v1110_v37, -inf  ;;  %v1350_v28 = vmax.f32 %v1348_v27, %v1349_v54  ;;  %v1364_v29 = vmax.f32 %v1362_v61, %v1363_v25 }
 0x224   : > { %v1358_v0 = vrot.slane %v1357_v20, 1  ;;  %v1565_v34 = vmax.f32 %v1563_v19, %v1564_v36  ;;  %v1571_v33 = vrot.slane %v1570_v3, 4  ;;  %v1578_v8 = vrot.slane %v1577_v59, 4 }
 0x225   : > { %v1345_v12 = vmax.f32 %v1343_v32, %v1344_v26  ;;  %v1585_v52 = vrot.slane %v1584_v22, 4  ;;  %v1351_v60 = vrot.slane %v1350_v28, 1  ;;  %v1365_v35 = vrot.slane %v1364_v29, 1 }
 0x226   : > { %v1359_v23 = vmax.f32 %v1357_v20, %v1358_v0  ;;  %v1566_v62 = vrot.slane %v1565_v34, 2  ;;  %v1572_v46 = vmax.f32 %v1570_v3, %v1571_v33  ;;  %v1579_v47 = vmax.f32 %v1577_v59, %v1578_v8 }
 0x227   : > { %v1700_v40 = vsel %vm1675_vm14, %v1345_v12, -inf  ;;  %v1586_v41 = vmax.f32 %v1584_v22, %v1585_v52  ;;  %v1352_v43 = vmax.f32 %v1350_v28, %v1351_v60  ;;  %v1366_v49 = vmax.f32 %v1364_v29, %v1365_v35 }
 0x228   : > { %v1702_v39 = vmax.f32 %v1700_v40, %v3106_v5  ;;  %v1706_v56 = vsel %vm1675_vm14, %v1359_v23, -inf  ;;  %v1567_v4 = vmax.f32 %v1565_v34, %v1566_v62  ;;  %v1573_v1 = vrot.slane %v1572_v46, 2 }
 0x229   : > { %v1708_v45 = vmax.f32 %v1706_v56, %v3109_v21  ;;  %v1580_v6 = vrot.slane %v1579_v47, 2  ;;  %v1703_v50 = vsel %vm1675_vm14, %v1352_v43, -inf  ;;  %v1709_v7 = vsel %vm1675_vm14, %v1366_v49, -inf }
 0x22a   : > { %v2162_v9 = vpack.c.bf16 %v1702_v39, %v1702_v39  ;;  %v1587_v10 = vrot.slane %v1586_v41, 2  ;;  %v1705_v11 = vmax.f32 %v1703_v50, %v3113_v30  ;;  %v3140_v53 = vmax.f32 %v1709_v7, %v1710_v63  ;;  %v3147_v30 = vld [vmem:[%s3350_s2] ss:$0 sm:$0xff] }
 0x22b   : > { %v2164_v13 = vpack.c.bf16 %v1708_v45, %v1708_v45  ;;  %v1568_v48 = vrot.slane %v1567_v4, 1  ;;  %v1755_v5 = vsel %vm1675_vm14, %v1639_v14, -inf  ;;  %v1574_v27 = vmax.f32 %v1572_v46, %v1573_v1 }
 0x22c   : > { %v1581_v55 = vmax.f32 %v1579_v47, %v1580_v6  ;;  %v1588_v21 = vmax.f32 %v1586_v41, %v1587_v10  ;;  %v1758_v61 = vsel %vm1675_vm14, %v1646_v57, -inf  ;;  %v2163_v18 = vpack.c.bf16 %v1705_v11, %v1705_v11 }
 0x22d   : > { %v1910_v32 = vunpack.c.l.b16 %v2164_v13  ;;  %v1569_v37 = vmax.f32 %v1567_v4, %v1568_v48  ;;  %v1575_v19 = vrot.slane %v1574_v27, 1  ;;  %v823_v63 = vadd.f32 %v3147_v30, %v2998_v38 }
 0x22e   : > { %v1582_v54 = vrot.slane %v1581_v55, 1  ;;  %v1589_v20 = vrot.slane %v1588_v21, 1  ;;  %v1908_v14 = vunpack.c.l.b16 %v2162_v9  ;;  %v1909_v25 = vunpack.c.l.b16 %v2163_v18 }
 0x22f   : > { %v1748_v36 = vsel %vm1675_vm14, %v1569_v37, -inf  ;;  %v855_v57 = vadd.f32 %v3147_v30, %v2989_v2  ;;  %v1576_v26 = vmax.f32 %v1574_v27, %v1575_v19  ;;  %v2165_v28 = vpack.c.bf16 %v3140_v53, %v3140_v53 }
 0x230   : > { %v1583_v3 = vmax.f32 %v1581_v55, %v1582_v54  ;;  %v1590_v59 = vmax.f32 %v1588_v21, %v1589_v20  ;;  %v1750_v22 = vmax.f32 %v1748_v36, %v3124_v17  ;;  %v1946_v0 = vsel %vm1932_vm15, %v1909_v25, %v1908_v14 }
 0x231   : > { %v865_v29 = vmax.f32 %v823_v63, 0.0  ;;  %v873_v34 = vmax.f32 %v855_v57, 0.0  ;;  %v3159_v38 = vsel %vm1934_vm0, %v1910_v32, %v1946_v0  ;;  %v1751_v12 = vsel %vm1675_vm14, %v1576_v26, -inf }
 0x232   : > { %v1754_v33 = vsel %vm1675_vm14, %v1583_v3, -inf  ;;  %v1757_v2 = vsel %vm1675_vm14, %v1590_v59, -inf  ;;  %v1753_v8 = vmax.f32 %v1751_v12, %v3127_v15  ;;  %v2178_v60 = vpack.c.bf16 %v1750_v22, %v1750_v22 }
 0x233   : > { %v1756_v52 = vmax.f32 %v1754_v33, %v1755_v5  ;;  %v3165_v17 = vmax.f32 %v1757_v2, %v1758_v61  ;;  %v1009_v23 = vcombine.high %v865_v29, %v865_v29  ;;  %v1016_v35 = vrot.slane %v865_v29, %v2849_v24 }
 0x234   : > { %v1145_v62 = vcombine.high %v873_v34, %v873_v34  ;;  %v1152_v40 = vrot.slane %v873_v34, %v2849_v24  ;;  %v2179_v46 = vpack.c.bf16 %v1753_v8, %v1753_v8  ;;  %v3173_v43 = vadd.f32 %v3147_v30, %v3003_v44 }
 0x235   : > { %v2180_v47 = vpack.c.bf16 %v1756_v52, %v1756_v52  ;;  %v2181_v41 = vpack.c.bf16 %v3165_v17, %v3165_v17  ;;  %v1023_v15 = vrot.slane %v1009_v23, %v2849_v24  ;;  %v1024_v49 = vcombine.high %v1016_v35, %v1016_v35 }
 0x236   : > { %v1423_v39 = vsel %vm1226_vm13, %v1016_v35, -inf  ;;  %v1159_v56 = vrot.slane %v1145_v62, %v2849_v24  ;;  %v1924_v45 = vunpack.c.l.b16 %v2178_v60  ;;  %v1925_v4 = vunpack.c.l.b16 %v2179_v46 }
 0x237   : > { %v1926_v1 = vunpack.c.l.b16 %v2180_v47  ;;  %v1424_v6 = vrot.slane %v1423_v39, 4  ;;  %v1025_v50 = vcombine.high %v1023_v15, %v1023_v15  ;;  %v1430_v7 = vsel %vm1226_vm13, %v1024_v49, -inf }
 0x238   : > { %v1437_v9 = vsel %vm1226_vm13, %v1023_v15, -inf  ;;  %v1160_v10 = vcombine.high %v1152_v40, %v1152_v40  ;;  %v1960_v44 = vsel %vm1932_vm15, %v1925_v4, %v1924_v45  ;;  %v1431_v13 = vrot.slane %v1430_v7, 4 }
 0x239   : > { %v1425_v11 = vmax.f32 %v1423_v39, %v1424_v6  ;;  %v1438_v48 = vrot.slane %v1437_v9, 4  ;;  %v3182_v5 = vsel %vm1934_vm0, %v1926_v1, %v1960_v44  ;;  %v1444_v27 = vsel %vm1226_vm13, %v1025_v50, -inf }
 0x23a   : > { %v1161_v55 = vcombine.high %v1159_v56, %v1159_v56  ;;  %v1647_v21 = vsel %vm1226_vm13, %v1152_v40, -inf  ;;  %v1432_v18 = vmax.f32 %v1430_v7, %v1431_v13  ;;  %v1445_v37 = vrot.slane %v1444_v27, 4 }
 0x23b   : > { %v1426_v61 = vrot.slane %v1425_v11, 2  ;;  %v1439_v32 = vmax.f32 %v1437_v9, %v1438_v48  ;;  %v1648_v19 = vrot.slane %v1647_v21, 4  ;;  %v1654_v54 = vsel %vm1226_vm13, %v1160_v10, -inf }
 0x23c   : > { %v1661_v20 = vsel %vm1226_vm13, %v1159_v56, -inf  ;;  %v1668_v63 = vsel %vm1226_vm13, %v1161_v55, -inf  ;;  %v1433_v25 = vrot.slane %v1432_v18, 2  ;;  %v1446_v57 = vmax.f32 %v1444_v27, %v1445_v37 }
 0x23d   : > { %v1427_v14 = vmax.f32 %v1425_v11, %v1426_v61  ;;  %v1440_v36 = vrot.slane %v1439_v32, 2  ;;  %v1649_v26 = vmax.f32 %v1647_v21, %v1648_v19  ;;  %v1655_v3 = vrot.slane %v1654_v54, 4 }
 0x23e   : > { %v1662_v59 = vrot.slane %v1661_v20, 4  ;;  %v1669_v22 = vrot.slane %v1668_v63, 4  ;;  %v1434_v29 = vmax.f32 %v1432_v18, %v1433_v25  ;;  %v1447_v12 = vrot.slane %v1446_v57, 2 }
 0x23f   : > { %v1428_v0 = vrot.slane %v1427_v14, 1  ;;  %v1441_v34 = vmax.f32 %v1439_v32, %v1440_v36  ;;  %v1650_v33 = vrot.slane %v1649_v26, 2  ;;  %v1656_v2 = vmax.f32 %v1654_v54, %v1655_v3 }
 0x240   : > { %v1663_v8 = vmax.f32 %v1661_v20, %v1662_v59  ;;  %v1670_v52 = vmax.f32 %v1668_v63, %v1669_v22  ;;  %v1435_v60 = vrot.slane %v1434_v29, 1  ;;  %v1448_v35 = vmax.f32 %v1446_v57, %v1447_v12 }
 0x241   : > { %v1429_v17 = vmax.f32 %v1427_v14, %v1428_v0  ;;  %v1442_v23 = vrot.slane %v1441_v34, 1  ;;  %v1651_v62 = vmax.f32 %v1649_v26, %v1650_v33  ;;  %v1657_v40 = vrot.slane %v1656_v2, 2 }
 0x242   : > { %v1664_v46 = vrot.slane %v1663_v8, 2  ;;  %v1671_v47 = vrot.slane %v1670_v52, 2  ;;  %v1911_v15 = vunpack.c.l.b16 %v2165_v28  ;;  %v1436_v49 = vmax.f32 %v1434_v29, %v1435_v60 }
 0x243   : > { %v1443_v39 = vmax.f32 %v1441_v34, %v1442_v23  ;;  %v1449_v56 = vrot.slane %v1448_v35, 1  ;;  %v1652_v45 = vrot.slane %v1651_v62, 1  ;;  %v1658_v4 = vmax.f32 %v1656_v2, %v1657_v40 }
 0x244   : > { %v1665_v1 = vmax.f32 %v1663_v8, %v1664_v46  ;;  %v1672_v6 = vmax.f32 %v1670_v52, %v1671_v47  ;;  %v1927_v50 = vunpack.c.l.b16 %v2181_v41  ;;  %v3193_v9 = vsel %vm1675_vm14, %v1429_v17, -inf }
 0x245   : > { %v1450_v7 = vmax.f32 %v1448_v35, %v1449_v56  ;;  %v863_v10 = vmax.f32 %v3173_v43, 0.0  ;;  %v1653_v44 = vmax.f32 %v1651_v62, %v1652_v45  ;;  %v1659_v11 = vrot.slane %v1658_v4, 1 }
 0x246   : > { %v1666_v53 = vrot.slane %v1665_v1, 1  ;;  %v1673_v28 = vrot.slane %v1672_v6, 1  ;;  %v3198_v13 = vsel %vm1675_vm14, %v1436_v49, -inf  ;;  %v3203_v41 = vsel %vm1936_vm1, %v1911_v15, %v3159_v38 }
 0x247   : > { %v975_v48 = vcombine.high %v863_v10, %v863_v10  ;;  %v982_v27 = vrot.slane %v863_v10, %v2849_v24  ;;  %v3206_v55 = vsel %vm1675_vm14, %v1443_v39, -inf  ;;  %v3209_v43 = vsel %vm1675_vm14, %v1450_v7, -inf }
 0x248   : > { %v1660_v21 = vmax.f32 %v1658_v4, %v1659_v11  ;;  %v1667_v61 = vmax.f32 %v1665_v1, %v1666_v53  ;;  %v847_v19 = vadd.f32 %v3147_v30, %v2993_v51  ;;  %v3217_v38 = vmax.f32 %v1672_v6, %v1673_v28 }
 0x249   : > { %v989_v18 = vrot.slane %v975_v48, %v2849_v24  ;;  %v990_v32 = vcombine.high %v982_v27, %v982_v27  ;;  %v1367_v37 = vsel %vm1226_vm13, %v982_v27, -inf  ;;  %v3220_v54 = vsel %vm1675_vm14, %v1653_v44, -inf }
 0x24a   : > { %v3223_v20 = vsel %vm1675_vm14, %v1660_v21, -inf  ;;  %v1368_v63 = vrot.slane %v1367_v37, 4  ;;  %v871_v57 = vmax.f32 %v847_v19, 0.0  ;;  %v3229_v51 = vsel %vm1936_vm1, %v1927_v50, %v3182_v5 }
 0x24b   : > { %v991_v14 = vcombine.high %v989_v18, %v989_v18  ;;  %v1374_v25 = vsel %vm1226_vm13, %v990_v32, -inf  ;;  %v1381_v36 = vsel %vm1226_vm13, %v989_v18, -inf  ;;  %v3246_v5 = vsel %vm1675_vm14, %v1667_v61, -inf }
 0x24c   : > { %v1369_v26 = vmax.f32 %v1367_v37, %v1368_v63  ;;  %v1375_v3 = vrot.slane %v1374_v25, 4  ;;  %v1382_v59 = vrot.slane %v1381_v36, 4  ;;  %v1111_v22 = vcombine.high %v871_v57, %v871_v57 }
 0x24d   : > { %v1388_v30 = vsel %vm1226_vm13, %v991_v14, -inf  ;;  %v1118_v0 = vrot.slane %v871_v57, %v2849_v24 }
 0x24e   : > { %v1370_v29 = vrot.slane %v1369_v26, 2  ;;  %v1376_v34 = vmax.f32 %v1374_v25, %v1375_v3  ;;  %v1383_v12 = vmax.f32 %v1381_v36, %v1382_v59  ;;  %v1389_v33 = vrot.slane %v1388_v30, 4 }
 0x24f   : > { %v1125_v2 = vrot.slane %v1111_v22, %v2849_v24  ;;  %v1126_v8 = vcombine.high %v1118_v0, %v1118_v0  ;;  %v1591_v52 = vsel %vm1226_vm13, %v1118_v0, -inf }
 0x250   : > { %v1371_v17 = vmax.f32 %v1369_v26, %v1370_v29  ;;  %v1377_v60 = vrot.slane %v1376_v34, 2  ;;  %v1384_v16 = vrot.slane %v1383_v12, 2  ;;  %v1390_v23 = vmax.f32 %v1388_v30, %v1389_v33 }
 0x251   : > { %v1127_v35 = vcombine.high %v1125_v2, %v1125_v2  ;;  %v1592_v62 = vrot.slane %v1591_v52, 4  ;;  %v1598_v42 = vsel %vm1226_vm13, %v1126_v8, -inf  ;;  %v1605_v31 = vsel %vm1226_vm13, %v1125_v2, -inf }
 0x252   : > { %v1372_v40 = vrot.slane %v1371_v17, 1  ;;  %v1378_v58 = vmax.f32 %v1376_v34, %v1377_v60  ;;  %v1385_v46 = vmax.f32 %v1383_v12, %v1384_v16  ;;  %v1391_v47 = vrot.slane %v1390_v23, 2 }
 0x253   : > { %v1593_v15 = vmax.f32 %v1591_v52, %v1592_v62  ;;  %v1599_v49 = vrot.slane %v1598_v42, 4  ;;  %v1606_v24 = vrot.slane %v1605_v31, 4  ;;  %v1612_v39 = vsel %vm1226_vm13, %v1127_v35, -inf }
 0x254   : > { %v1373_v56 = vmax.f32 %v1371_v17, %v1372_v40  ;;  %v1379_v45 = vrot.slane %v1378_v58, 1  ;;  %v1386_v4 = vrot.slane %v1385_v46, 1  ;;  %v1392_v1 = vmax.f32 %v1390_v23, %v1391_v47 }
 0x255   : > { %v1594_v6 = vrot.slane %v1593_v15, 2  ;;  %v1600_v50 = vmax.f32 %v1598_v42, %v1599_v49  ;;  %v1607_v7 = vmax.f32 %v1605_v31, %v1606_v24  ;;  %v1613_v10 = vrot.slane %v1612_v39, 4 }
 0x256   : > { %v1380_v44 = vmax.f32 %v1378_v58, %v1379_v45  ;;  %v1387_v11 = vmax.f32 %v1385_v46, %v1386_v4  ;;  %v1393_v53 = vrot.slane %v1392_v1, 1  ;;  %v1712_v28 = vsel %vm1675_vm14, %v1373_v56, -inf }
 0x257   : > { %v1714_v48 = vmax.f32 %v1712_v28, %v3193_v9  ;;  %v1595_v27 = vmax.f32 %v1593_v15, %v1594_v6  ;;  %v1601_v21 = vrot.slane %v1600_v50, 2  ;;  %v1608_v61 = vrot.slane %v1607_v7, 2 }
 0x258   : > { %v1394_v18 = vmax.f32 %v1392_v1, %v1393_v53  ;;  %v1715_v32 = vsel %vm1675_vm14, %v1380_v44, -inf  ;;  %v1718_v37 = vsel %vm1675_vm14, %v1387_v11, -inf  ;;  %v1614_v19 = vmax.f32 %v1612_v39, %v1613_v10 }
 0x259   : > { %v1717_v63 = vmax.f32 %v1715_v32, %v3198_v13  ;;  %v1720_v14 = vmax.f32 %v1718_v37, %v3206_v55  ;;  %v2166_v25 = vpack.c.bf16 %v1714_v48, %v1714_v48  ;;  %v1596_v36 = vrot.slane %v1595_v27, 1 }
 0x25a   : > { %v1721_v57 = vsel %vm1675_vm14, %v1394_v18, -inf  ;;  %v1602_v26 = vmax.f32 %v1600_v50, %v1601_v21  ;;  %v1609_v3 = vmax.f32 %v1607_v7, %v1608_v61  ;;  %v1615_v9 = vrot.slane %v1614_v19, 2 }
 0x25b   : > { %v1723_v59 = vmax.f32 %v1721_v57, %v3209_v43  ;;  %v2167_v30 = vpack.c.bf16 %v1717_v63, %v1717_v63  ;;  %v2168_v22 = vpack.c.bf16 %v1720_v14, %v1720_v14  ;;  %v1912_v0 = vunpack.c.l.b16 %v2166_v25 }
 0x25c   : > { %v1597_v29 = vmax.f32 %v1595_v27, %v1596_v36  ;;  %v1603_v34 = vrot.slane %v1602_v26, 1  ;;  %v1610_v12 = vrot.slane %v1609_v3, 1  ;;  %v1616_v33 = vmax.f32 %v1614_v19, %v1615_v9 }
 0x25d   : > { %v2169_v2 = vpack.c.bf16 %v1723_v59, %v1723_v59  ;;  %v1913_v13 = vunpack.c.l.b16 %v2167_v30  ;;  %v1914_v8 = vunpack.c.l.b16 %v2168_v22  ;;  %v1949_v55 = vsel %vm1938_vm2, %v1912_v0, %v3203_v41 }
 0x25e   : > { %v1604_v52 = vmax.f32 %v1602_v26, %v1603_v34  ;;  %v1611_v17 = vmax.f32 %v1609_v3, %v1610_v12  ;;  %v1617_v60 = vrot.slane %v1616_v33, 1  ;;  %v1760_v43 = vsel %vm1675_vm14, %v1597_v29, -inf }
 0x25f   : > { %v1770_v16 = vsel %vm1675_vm14, %v3217_v38, -inf  ;;  %v1915_v23 = vunpack.c.l.b16 %v2169_v2  ;;  %v1950_v35 = vsel %vm1940_vm3, %v1913_v13, %v1949_v55  ;;  %v1762_v62 = vmax.f32 %v1760_v43, %v3220_v54 }
 0x260   : > { %v1951_v42 = vsel %vm1942_vm4, %v1914_v8, %v1950_v35  ;;  %v1618_v31 = vmax.f32 %v1616_v33, %v1617_v60  ;;  %v1763_v41 = vsel %vm1675_vm14, %v1604_v52, -inf  ;;  %v1766_v40 = vsel %vm1675_vm14, %v1611_v17, -inf }
 0x261   : > { %v1952_v58 = vsel %vm1944_vm5, %v1915_v23, %v1951_v42  ;;  %v1765_v46 = vmax.f32 %v1763_v41, %v3223_v20  ;;  %v1768_v47 = vmax.f32 %v1766_v40, %v3246_v5  ;;  %v2182_v38 = vpack.c.bf16 %v1762_v62, %v1762_v62 }
 0x262   : > { %v1968_v15 = vpack.c.b16 %v1952_v58, %v1952_v58  ;;  %v1769_v54 = vsel %vm1675_vm14, %v1618_v31, -inf }
 0x263   : > { %v1771_v49 = vmax.f32 %v1769_v54, %v1770_v16  ;;  %v2183_v24 = vpack.c.bf16 %v1765_v46, %v1765_v46  ;;  %v2184_v39 = vpack.c.bf16 %v1768_v47, %v1768_v47  ;;  %v1928_v56 = vunpack.c.l.b16 %v2182_v38 }
 0x264   : > { %1977 = vst.msk [vmem:[%s3233_s27 + $0x4] sm:$0xf] %vm1975_vm6, %v1968_v15 }
 0x265   : > { %v2185_v45 = vpack.c.bf16 %v1771_v49, %v1771_v49  ;;  %v1929_v20 = vunpack.c.l.b16 %v2183_v24  ;;  %v1963_v5 = vsel %vm1938_vm2, %v1928_v56, %v3229_v51  ;;  %v1930_v4 = vunpack.c.l.b16 %v2184_v39 }
 0x267   : > { %v1931_v1 = vunpack.c.l.b16 %v2185_v45  ;;  %v1964_v6 = vsel %vm1940_vm3, %v1929_v20, %v1963_v5 }
 0x268   : > { %v1965_v50 = vsel %vm1942_vm4, %v1930_v4, %v1964_v6 }
 0x269   : > { %v1966_v7 = vsel %vm1944_vm5, %v1931_v1, %v1965_v50 }
 0x26a   : > { %v1970_v10 = vpack.c.b16 %v1966_v7, %v1966_v7 }
 0x26c   : > { %1979 = vst.msk [vmem:[%s3233_s27 + $0xc] sm:$0xf] %vm1975_vm6, %v1970_v10 }
 0x26d   : > { %2340 = shalt.err (!%p2337_p6)
}
 0x26e   : > { %s2341_s21 = scalar_lea.hbm %s3290_s7, 256  ;;  %s2345_s28 = scalar_lea.hbm %s3351_s3, 1024 }
 0x26f   : > { %p2342_p7 = scmp.ne.s32.totalorder %s3290_s7, %s2341_s21  ;;  %p2346_p11 = scmp.lt.u32.totalorder %s3290_s7, %s3351_s3 }
 0x270   : > { %p2347_p12 = scmp.lt.u32.totalorder %s2345_s28, %s2341_s21  ;;  %p2349_p0 = scmp.lt.u32.totalorder %s2341_s21, %s3290_s7 }
 0x271   : > { %p2343_p9 = pnand %p2342_p7, %p2507_p3 }
 0x272   : > { %p2348_p13 = por %p2347_p12, %p2346_p11 }
 0x273   : > { %p2344_p10 = pneg %p2343_p9 }
 0x274   : > { %p2350_p1 = por %p2349_p0, %p2348_p13 }
 0x276   : > { %p2351_p2 = pnand %p2350_p1, %p2344_p10 }
 0x278   : > { %2354 = shalt.err (!%p2351_p2)
}
 0x279   : > { %s2434_s16 = smov 64   ;;  %s2435_s5 = smov 4  }
 0x27a   : > { %2221 = dma.vmem_to_hbm [thread:$0]  (%p2507_p3), %s3285_s15, 256, %s3290_s7, %s3296_s8, %s2434_s16, %s2434_s16, %s2435_s5  }
 0x27b PF: > { %p2227_p4 = scmp.ge.s32.totalorder %s2421_s19, 2  ;;  %s2011_s6 = sand.u32 1, %s2393_s12  }
 0x27c   : > { %s2012_s9 = scalar_lea.sflag [#allocation3], %s2011_s6 }
 0x27d   : > { %p2224_p5 = pnand %p2227_p4, %p2516_p8 }
 0x27f   : > { %2388 = dma.done.wait (!%p2224_p5), %s2012_s9, 256  }
 0x280   : > { %2390 = vsyncadd (!%p2224_p5), %s2012_s9, 4294967040  ;;  %s16_s19 = sadd.s32 1, %s2421_s19   ;;  %s3354_s12 = smov %s2397_s13 }
 0x281   : > { %p13_p6 = scmp.ge.s32.totalorder %s16_s19, 6   ;;  %s3355_s13 = smov %s2401_s14 }
 0x282   : > { %s3356_s14 = smov %s2525_s30  ;;  %s3357_s15 = smov %s2413_s17 }
 0x283   : > { %s3358_s16 = smov %s2417_s18  ;;  %s3359_s17 = smov %s3362_s22 }
 0x284   : > { %s3360_s18 = smov %s3366_s23  ;;  %15 = sbr.rel (!%p13_p6) target bundleno = 5 (0x5), region = 68 }
 0x28b   :  { %2017 = vsyncpa [#allocation3], 1 }
 0x28c   :  { %2019 = vsyncpa [#allocation3 + $0x1], 1 }

</bundles_post_ra>
